<compile_context>
chip_gen: v7x
topology: tpu7x:2x2x1
jax: 0.10.0
libtpu: 0.0.40
codegen_flags: <defaults>
</compile_context>

<pallas_src>
import functools

import jax
import jax.numpy as jnp
from jax.experimental import pallas as pl
from jax.experimental.pallas import tpu as pltpu

LN_EPS = 1e-5
_GELU_C0 = 0.7978845608028654           # sqrt(2/pi)
_GELU_C1 = 0.044715 * _GELU_C0


def _layernorm(v, g, b):
    mu = jnp.mean(v, axis=-1, keepdims=True)
    d = v - mu
    var = jnp.mean(d * d, axis=-1, keepdims=True)
    return d * jax.lax.rsqrt(var + LN_EPS) * g + b


def _gelu_tanh(u):
    inner = _GELU_C0 * u + _GELU_C1 * (u * u) * u
    return 0.5 * u * (1.0 + jnp.tanh(inner))


def block_kernel(
    x_ref,
    g1_ref, b1_ref,
    wqkv_ref, bqkv_ref,
    wo_ref, bo_ref,
    g2_ref, b2_ref,
    wfc_ref, bfc_ref,
    wpr_ref, bpr_ref,
    out_ref,
    y_scr,
    *, n_head,
):
    bb, T, C = x_ref.shape
    M = bb * T
    hd = C // n_head
    scale = jnp.float32(1.0 / (hd ** 0.5))
    bf16 = jnp.bfloat16
    f32 = jnp.float32

    x = x_ref[...].reshape(M, C)                                     # (M, C) f32

    # ---- ln_1 + causal self-attention ----
    h = _layernorm(x, g1_ref[...], b1_ref[...])
    qkv = jnp.dot(h.astype(bf16), wqkv_ref[...],
                  preferred_element_type=f32) + bqkv_ref[...]        # (M, 3C)

    # causal mask, shared across the batch block
    row = jax.lax.broadcasted_iota(jnp.int32, (T, T), 0)
    col = jax.lax.broadcasted_iota(jnp.int32, (T, T), 1)
    causal = (row >= col)[None]                                      # (1, T, T)

    for hdx in range(n_head):                 # static loop over heads
        lo = hdx * hd
        q = (qkv[:, lo:lo + hd] * scale).reshape(bb, T, hd)          # scale folded into q
        k = qkv[:, C + lo:C + lo + hd].reshape(bb, T, hd)
        v = qkv[:, 2 * C + lo:2 * C + lo + hd].reshape(bb, T, hd)

        s = jnp.einsum("bqd,bkd->bqk", q.astype(bf16), k.astype(bf16),
                       preferred_element_type=f32)                   # (bb, T, T)
        s = jnp.where(causal, s, -jnp.inf)
        s = s - jnp.max(s, axis=-1, keepdims=True)
        p = jnp.exp(s)
        p = p * pl.reciprocal(jnp.sum(p, axis=-1, keepdims=True), approx=True)
        o = jnp.einsum("bqk,bkd->bqd", p.astype(bf16), v.astype(bf16),
                       preferred_element_type=f32)                   # (bb, T, hd)
        y_scr[:, lo:lo + hd] = o.reshape(M, hd)   # write merged output once (no concat)

    y = jnp.dot(y_scr[...].astype(bf16), wo_ref[...],
                preferred_element_type=f32) + bo_ref[...]            # (M, C)
    x1 = x + y

    # ---- ln_2 + MLP (GELU tanh) ----
    h2 = _layernorm(x1, g2_ref[...], b2_ref[...])
    u = jnp.dot(h2.astype(bf16), wfc_ref[...],
                preferred_element_type=f32) + bfc_ref[...]           # (M, 4C)
    u = _gelu_tanh(u)
    m = jnp.dot(u.astype(bf16), wpr_ref[...],
                preferred_element_type=f32) + bpr_ref[...]           # (M, C)

    out_ref[...] = (x1 + m).reshape(bb, T, C)


def _pick_batch_block(B, T, target_rows=256):
    """Largest divisor of B such that Bb*T ~ target matmul M dimension."""
    bb = max(1, min(B, max(1, target_rows // max(T, 1))))
    while B % bb:
        bb -= 1
    return bb


def block_forward(x, params, n_head):
    (g1, b1, wqkv, bqkv, wo, bo, g2, b2, wfc, bfc, wpr, bpr) = params
    B, T, C = x.shape
    bb = _pick_batch_block(B, T)
    bf16 = jnp.bfloat16

    # bf16 weights for MXU-native matmuls; biases / LN params stay f32.
    wqkv_b, wo_b, wfc_b, wpr_b = (w.astype(bf16) for w in (wqkv, wo, wfc, wpr))

    def const_spec(shape):
        # Grid-invariant operand: keep a single resident copy (no double buffer).
        return pl.BlockSpec(shape, lambda b: (0,) * len(shape),
                            pipeline_mode=pl.Buffered(1))

    in_specs = [
        pl.BlockSpec((bb, T, C), lambda b: (b, 0, 0)),    # x
        const_spec((1, C)), const_spec((1, C)),           # ln_1 gamma, beta
        const_spec((C, 3 * C)), const_spec((1, 3 * C)),   # c_attn W, b
        const_spec((C, C)), const_spec((1, C)),           # attn c_proj W, b
        const_spec((1, C)), const_spec((1, C)),           # ln_2 gamma, beta
        const_spec((C, 4 * C)), const_spec((1, 4 * C)),   # c_fc W, b
        const_spec((4 * C, C)), const_spec((1, C)),       # mlp c_proj W, b
    ]

    return pl.pallas_call(
        functools.partial(block_kernel, n_head=n_head),
        out_shape=jax.ShapeDtypeStruct((B, T, C), jnp.float32),
        grid_spec=pltpu.PrefetchScalarGridSpec(
            num_scalar_prefetch=0,
            grid=(B // bb,),
            in_specs=in_specs,
            out_specs=pl.BlockSpec((bb, T, C), lambda b: (b, 0, 0)),
            scratch_shapes=[pltpu.VMEM((bb * T, C), jnp.float32)],   # merged attn output
        ),
        compiler_params=pltpu.CompilerParams(
            dimension_semantics=("parallel",),          # batch blocks independent (megacore)
            vmem_limit_bytes=48 * 1024 * 1024,
        ),
    )(x, g1, b1, wqkv_b, bqkv, wo_b, bo, g2, b2, wfc_b, bfc, wpr_b, bpr)


# ---------------- pure-JAX f32 reference (for verification) ----------------
def ref_block(x, params, n_head):
    (g1, b1, wqkv, bqkv, wo, bo, g2, b2, wfc, bfc, wpr, bpr) = params
    B, T, C = x.shape
    hd = C // n_head

    def ln(v, g, b):
        mu = jnp.mean(v, axis=-1, keepdims=True)
        var = jnp.mean((v - mu) ** 2, axis=-1, keepdims=True)
        return (v - mu) / jnp.sqrt(var + LN_EPS) * g[0] + b[0]

    h = ln(x, g1, b1)
    qkv = h @ wqkv + bqkv[0]
    q, k, v = jnp.split(qkv, 3, axis=-1)
    q = q.reshape(B, T, n_head, hd).transpose(0, 2, 1, 3)
    k = k.reshape(B, T, n_head, hd).transpose(0, 2, 1, 3)
    v = v.reshape(B, T, n_head, hd).transpose(0, 2, 1, 3)
    s = jnp.einsum("bhtd,bhsd->bhts", q, k) / jnp.sqrt(hd)
    mask = jnp.tril(jnp.ones((T, T), bool))
    s = jnp.where(mask, s, -jnp.inf)
    p = jax.nn.softmax(s, axis=-1)
    y = jnp.einsum("bhts,bhsd->bhtd", p, v).transpose(0, 2, 1, 3).reshape(B, T, C)
    y = y @ wo + bo[0]
    x1 = x + y
    h2 = ln(x1, g2, b2)
    u = h2 @ wfc + bfc[0]
    u = 0.5 * u * (1.0 + jnp.tanh(jnp.sqrt(2.0 / jnp.pi) * (u + 0.044715 * u ** 3)))
    return x1 + (u @ wpr + bpr[0])


if __name__ == "__main__":
    B, T, C, n_head = 2, 8, 32, 4

    key = jax.random.PRNGKey(0)
    ks = jax.random.split(key, 16)
    f32 = jnp.float32
    s = 0.02  # deterministic small init

    x = jax.random.normal(ks[0], (B, T, C), f32)

    params = (
        jnp.ones((1, C), f32),                                   # ln_1 gamma
        jnp.zeros((1, C), f32),                                  # ln_1 beta
        jax.random.normal(ks[1], (C, 3 * C), f32) * s,           # c_attn W (in, out)
        jax.random.normal(ks[2], (1, 3 * C), f32) * s,           # c_attn b
        jax.random.normal(ks[3], (C, C), f32) * s,               # attn c_proj W
        jax.random.normal(ks[4], (1, C), f32) * s,               # attn c_proj b
        jnp.ones((1, C), f32),                                   # ln_2 gamma
        jnp.zeros((1, C), f32),                                  # ln_2 beta
        jax.random.normal(ks[5], (C, 4 * C), f32) * s,           # c_fc W
        jax.random.normal(ks[6], (1, 4 * C), f32) * s,           # c_fc b
        jax.random.normal(ks[7], (4 * C, C), f32) * s,           # mlp c_proj W
        jax.random.normal(ks[8], (1, C), f32) * s,               # mlp c_proj b
    )

    out = block_forward(x, params, n_head)
    out = jax.block_until_ready(out)

    ref = ref_block(x, params, n_head)
    assert out.shape == (B, T, C)
    err = float(jnp.max(jnp.abs(out - ref)))
    # bf16 matmul inputs -> slightly looser tolerance than pure-f32.
    assert jnp.allclose(out, ref, atol=5e-3, rtol=5e-3), err

    print("KERNEL_OK")
</pallas_src>

<mosaic_0001>
module attributes {stable_mosaic.version = 11 : i64} {
  func.func @block_kernel(%arg0: i32, %arg1: memref<2x8x32xf32, #tpu.memory_space<vmem>>, %arg2: memref<1x32xf32, #tpu.memory_space<vmem>>, %arg3: memref<1x32xf32, #tpu.memory_space<vmem>>, %arg4: memref<32x96xbf16, #tpu.memory_space<vmem>>, %arg5: memref<1x96xf32, #tpu.memory_space<vmem>>, %arg6: memref<32x32xbf16, #tpu.memory_space<vmem>>, %arg7: memref<1x32xf32, #tpu.memory_space<vmem>>, %arg8: memref<1x32xf32, #tpu.memory_space<vmem>>, %arg9: memref<1x32xf32, #tpu.memory_space<vmem>>, %arg10: memref<32x128xbf16, #tpu.memory_space<vmem>>, %arg11: memref<1x128xf32, #tpu.memory_space<vmem>>, %arg12: memref<128x32xbf16, #tpu.memory_space<vmem>>, %arg13: memref<1x32xf32, #tpu.memory_space<vmem>>, %arg14: memref<2x8x32xf32, #tpu.memory_space<vmem>>, %arg15: memref<16x32xf32, #tpu.memory_space<vmem>>) attributes {dimension_semantics = [#tpu.dimension_semantics<parallel>], iteration_bounds = array<i64: 1>, scalar_prefetch = 0 : i64, scratch_operands = 1 : i64, tpu.core_type = #tpu.core_type<tc>, window_params = [{transform_indices = @transform_0, window_bounds = array<i64: 2, 8, 32>}, {pipeline_mode = #tpu.pipeline_mode<synchronous>, transform_indices = @transform_1, window_bounds = array<i64: 1, 32>}, {pipeline_mode = #tpu.pipeline_mode<synchronous>, transform_indices = @transform_2, window_bounds = array<i64: 1, 32>}, {pipeline_mode = #tpu.pipeline_mode<synchronous>, transform_indices = @transform_3, window_bounds = array<i64: 32, 96>}, {pipeline_mode = #tpu.pipeline_mode<synchronous>, transform_indices = @transform_4, window_bounds = array<i64: 1, 96>}, {pipeline_mode = #tpu.pipeline_mode<synchronous>, transform_indices = @transform_5, window_bounds = array<i64: 32, 32>}, {pipeline_mode = #tpu.pipeline_mode<synchronous>, transform_indices = @transform_6, window_bounds = array<i64: 1, 32>}, {pipeline_mode = #tpu.pipeline_mode<synchronous>, transform_indices = @transform_7, window_bounds = array<i64: 1, 32>}, {pipeline_mode = #tpu.pipeline_mode<synchronous>, transform_indices = @transform_8, window_bounds = array<i64: 1, 32>}, {pipeline_mode = #tpu.pipeline_mode<synchronous>, transform_indices = @transform_9, window_bounds = array<i64: 32, 128>}, {pipeline_mode = #tpu.pipeline_mode<synchronous>, transform_indices = @transform_10, window_bounds = array<i64: 1, 128>}, {pipeline_mode = #tpu.pipeline_mode<synchronous>, transform_indices = @transform_11, window_bounds = array<i64: 128, 32>}, {pipeline_mode = #tpu.pipeline_mode<synchronous>, transform_indices = @transform_12, window_bounds = array<i64: 1, 32>}, {transform_indices = @transform_13, window_bounds = array<i64: 2, 8, 32>}]} {
    %c0 = arith.constant 0 : index
    %c0_0 = arith.constant 0 : index
    %c0_1 = arith.constant 0 : index
    %0 = vector.load %arg1[%c0, %c0_0, %c0_1] : memref<2x8x32xf32, #tpu.memory_space<vmem>>, vector<2x8x32xf32>
    %1 = vector.shape_cast %0 : vector<2x8x32xf32> to vector<16x32xf32>
    %c0_2 = arith.constant 0 : index
    %c0_3 = arith.constant 0 : index
    %2 = vector.load %arg2[%c0_2, %c0_3] : memref<1x32xf32, #tpu.memory_space<vmem>>, vector<1x32xf32>
    %c0_4 = arith.constant 0 : index
    %c0_5 = arith.constant 0 : index
    %3 = vector.load %arg3[%c0_4, %c0_5] : memref<1x32xf32, #tpu.memory_space<vmem>>, vector<1x32xf32>
    %cst = arith.constant dense<0.000000e+00> : vector<16xf32>
    %4 = vector.multi_reduction <add>, %1, %cst [1] : vector<16x32xf32> to vector<16xf32>
    %5 = vector.shape_cast %4 : vector<16xf32> to vector<16x1xf32>
    %cst_6 = arith.constant 3.200000e+01 : f32
    %6 = vector.broadcast %cst_6 : f32 to vector<16x1xf32>
    %7 = arith.divf %5, %6 : vector<16x1xf32>
    %8 = vector.broadcast %7 : vector<16x1xf32> to vector<16x32xf32>
    %9 = arith.subf %1, %8 : vector<16x32xf32>
    %10 = arith.mulf %9, %9 : vector<16x32xf32>
    %cst_7 = arith.constant dense<0.000000e+00> : vector<16xf32>
    %11 = vector.multi_reduction <add>, %10, %cst_7 [1] : vector<16x32xf32> to vector<16xf32>
    %12 = vector.shape_cast %11 : vector<16xf32> to vector<16x1xf32>
    %cst_8 = arith.constant 3.200000e+01 : f32
    %13 = vector.broadcast %cst_8 : f32 to vector<16x1xf32>
    %14 = arith.divf %12, %13 : vector<16x1xf32>
    %cst_9 = arith.constant 9.99999974E-6 : f32
    %15 = vector.broadcast %cst_9 : f32 to vector<16x1xf32>
    %16 = arith.addf %14, %15 : vector<16x1xf32>
    %17 = math.rsqrt %16 : vector<16x1xf32>
    %18 = vector.broadcast %17 : vector<16x1xf32> to vector<16x32xf32>
    %19 = arith.mulf %9, %18 : vector<16x32xf32>
    %20 = vector.broadcast %2 : vector<1x32xf32> to vector<16x32xf32>
    %21 = arith.mulf %19, %20 : vector<16x32xf32>
    %22 = vector.broadcast %3 : vector<1x32xf32> to vector<16x32xf32>
    %23 = arith.addf %21, %22 : vector<16x32xf32>
    %24 = arith.truncf %23 : vector<16x32xf32> to vector<16x32xbf16>
    %c0_10 = arith.constant 0 : index
    %c0_11 = arith.constant 0 : index
    %25 = vector.load %arg4[%c0_10, %c0_11] : memref<32x96xbf16, #tpu.memory_space<vmem>>, vector<32x96xbf16>
    %cst_12 = arith.constant dense<0.000000e+00> : vector<16x96xf32>
    %26 = tpu.matmul %24, %25, %cst_12 {dimension_numbers = #tpu.dot_dimension_numbers<[1], [0], [0], [1], [0, 0, 1, 1], [], []>} : vector<16x32xbf16>, vector<32x96xbf16>, vector<16x96xf32> -> vector<16x96xf32>
    %c0_13 = arith.constant 0 : index
    %c0_14 = arith.constant 0 : index
    %27 = vector.load %arg5[%c0_13, %c0_14] : memref<1x96xf32, #tpu.memory_space<vmem>>, vector<1x96xf32>
    %28 = vector.broadcast %27 : vector<1x96xf32> to vector<16x96xf32>
    %29 = arith.addf %26, %28 : vector<16x96xf32>
    %30 = tpu.iota {dimensions = array<i32: 0>} : vector<8x8xi32>
    %31 = tpu.iota {dimensions = array<i32: 1>} : vector<8x8xi32>
    %32 = arith.cmpi sge, %30, %31 : vector<8x8xi32>
    %33 = vector.shape_cast %32 : vector<8x8xi1> to vector<1x8x8xi1>
    %34 = vector.extract_strided_slice %29 {offsets = [0, 0], sizes = [16, 8], strides = [1, 1]} : vector<16x96xf32> to vector<16x8xf32>
    %cst_15 = arith.constant 0.353553385 : f32
    %35 = vector.broadcast %cst_15 : f32 to vector<16x8xf32>
    %36 = arith.mulf %34, %35 : vector<16x8xf32>
    %37 = vector.shape_cast %36 : vector<16x8xf32> to vector<2x8x8xf32>
    %38 = vector.extract_strided_slice %29 {offsets = [0, 32], sizes = [16, 8], strides = [1, 1]} : vector<16x96xf32> to vector<16x8xf32>
    %39 = vector.shape_cast %38 : vector<16x8xf32> to vector<2x8x8xf32>
    %40 = vector.extract_strided_slice %29 {offsets = [0, 64], sizes = [16, 8], strides = [1, 1]} : vector<16x96xf32> to vector<16x8xf32>
    %41 = vector.shape_cast %40 : vector<16x8xf32> to vector<2x8x8xf32>
    %42 = arith.truncf %37 : vector<2x8x8xf32> to vector<2x8x8xbf16>
    %43 = arith.truncf %39 : vector<2x8x8xf32> to vector<2x8x8xbf16>
    "tpu.trace_start"() <{level = 10 : i32, message = "bqd,bkd->bqk"}> : () -> ()
    %cst_16 = arith.constant dense<0.000000e+00> : vector<2x8x8xf32>
    %44 = tpu.matmul %42, %43, %cst_16 {dimension_numbers = #tpu.dot_dimension_numbers<[2], [2], [1], [1], [0, 0, 0, 1, 1, 1], [0], [0]>} : vector<2x8x8xbf16>, vector<2x8x8xbf16>, vector<2x8x8xf32> -> vector<2x8x8xf32>
    %cst_17 = arith.constant 0xFF800000 : f32
    "tpu.trace_stop"() : () -> ()
    %45 = vector.shape_cast %33 : vector<1x8x8xi1> to vector<1x8x8xi1>
    %46 = vector.broadcast %45 : vector<1x8x8xi1> to vector<2x8x8xi1>
    %47 = vector.broadcast %cst_17 : f32 to vector<2x8x8xf32>
    %48 = arith.select %46, %44, %47 : vector<2x8x8xi1>, vector<2x8x8xf32>
    %cst_18 = arith.constant dense<0xFF800000> : vector<2x8xf32>
    %49 = vector.multi_reduction <maximumf>, %48, %cst_18 [2] : vector<2x8x8xf32> to vector<2x8xf32>
    %50 = vector.shape_cast %49 : vector<2x8xf32> to vector<2x8x1xf32>
    %51 = vector.broadcast %50 : vector<2x8x1xf32> to vector<2x8x8xf32>
    %52 = arith.subf %48, %51 : vector<2x8x8xf32>
    %53 = math.exp %52 : vector<2x8x8xf32>
    %cst_19 = arith.constant dense<0.000000e+00> : vector<2x8xf32>
    %54 = vector.multi_reduction <add>, %53, %cst_19 [2] : vector<2x8x8xf32> to vector<2x8xf32>
    %55 = vector.shape_cast %54 : vector<2x8xf32> to vector<2x8x1xf32>
    %56 = tpu.reciprocal %55 {approx = true} : vector<2x8x1xf32> -> vector<2x8x1xf32>
    %57 = vector.broadcast %56 : vector<2x8x1xf32> to vector<2x8x8xf32>
    %58 = arith.mulf %53, %57 : vector<2x8x8xf32>
    %59 = arith.truncf %58 : vector<2x8x8xf32> to vector<2x8x8xbf16>
    %60 = arith.truncf %41 : vector<2x8x8xf32> to vector<2x8x8xbf16>
    "tpu.trace_start"() <{level = 10 : i32, message = "bqk,bkd->bqd"}> : () -> ()
    %cst_20 = arith.constant dense<0.000000e+00> : vector<2x8x8xf32>
    %61 = tpu.matmul %59, %60, %cst_20 {dimension_numbers = #tpu.dot_dimension_numbers<[2], [1], [1], [2], [0, 0, 0, 1, 1, 2], [0], [0]>} : vector<2x8x8xbf16>, vector<2x8x8xbf16>, vector<2x8x8xf32> -> vector<2x8x8xf32>
    "tpu.trace_stop"() : () -> ()
    %62 = vector.shape_cast %61 : vector<2x8x8xf32> to vector<16x8xf32>
    %c0_21 = arith.constant 0 : index
    %c0_22 = arith.constant 0 : index
    %63 = vector.load %arg15[%c0_21, %c0_22] : memref<16x32xf32, #tpu.memory_space<vmem>>, vector<16x8xf32>
    tpu.vector_store %arg15[%c0_21, %c0_22], %62 {strides = array<i32>} : memref<16x32xf32, #tpu.memory_space<vmem>>, vector<16x8xf32>,
    %64 = vector.extract_strided_slice %29 {offsets = [0, 8], sizes = [16, 8], strides = [1, 1]} : vector<16x96xf32> to vector<16x8xf32>
    %cst_23 = arith.constant 0.353553385 : f32
    %65 = vector.broadcast %cst_23 : f32 to vector<16x8xf32>
    %66 = arith.mulf %64, %65 : vector<16x8xf32>
    %67 = vector.shape_cast %66 : vector<16x8xf32> to vector<2x8x8xf32>
    %68 = vector.extract_strided_slice %29 {offsets = [0, 40], sizes = [16, 8], strides = [1, 1]} : vector<16x96xf32> to vector<16x8xf32>
    %69 = vector.shape_cast %68 : vector<16x8xf32> to vector<2x8x8xf32>
    %70 = vector.extract_strided_slice %29 {offsets = [0, 72], sizes = [16, 8], strides = [1, 1]} : vector<16x96xf32> to vector<16x8xf32>
    %71 = vector.shape_cast %70 : vector<16x8xf32> to vector<2x8x8xf32>
    %72 = arith.truncf %67 : vector<2x8x8xf32> to vector<2x8x8xbf16>
    %73 = arith.truncf %69 : vector<2x8x8xf32> to vector<2x8x8xbf16>
    "tpu.trace_start"() <{level = 10 : i32, message = "bqd,bkd->bqk"}> : () -> ()
    %cst_24 = arith.constant dense<0.000000e+00> : vector<2x8x8xf32>
    %74 = tpu.matmul %72, %73, %cst_24 {dimension_numbers = #tpu.dot_dimension_numbers<[2], [2], [1], [1], [0, 0, 0, 1, 1, 1], [0], [0]>} : vector<2x8x8xbf16>, vector<2x8x8xbf16>, vector<2x8x8xf32> -> vector<2x8x8xf32>
    %cst_25 = arith.constant 0xFF800000 : f32
    "tpu.trace_stop"() : () -> ()
    %75 = vector.shape_cast %33 : vector<1x8x8xi1> to vector<1x8x8xi1>
    %76 = vector.broadcast %75 : vector<1x8x8xi1> to vector<2x8x8xi1>
    %77 = vector.broadcast %cst_25 : f32 to vector<2x8x8xf32>
    %78 = arith.select %76, %74, %77 : vector<2x8x8xi1>, vector<2x8x8xf32>
    %cst_26 = arith.constant dense<0xFF800000> : vector<2x8xf32>
    %79 = vector.multi_reduction <maximumf>, %78, %cst_26 [2] : vector<2x8x8xf32> to vector<2x8xf32>
    %80 = vector.shape_cast %79 : vector<2x8xf32> to vector<2x8x1xf32>
    %81 = vector.broadcast %80 : vector<2x8x1xf32> to vector<2x8x8xf32>
    %82 = arith.subf %78, %81 : vector<2x8x8xf32>
    %83 = math.exp %82 : vector<2x8x8xf32>
    %cst_27 = arith.constant dense<0.000000e+00> : vector<2x8xf32>
    %84 = vector.multi_reduction <add>, %83, %cst_27 [2] : vector<2x8x8xf32> to vector<2x8xf32>
    %85 = vector.shape_cast %84 : vector<2x8xf32> to vector<2x8x1xf32>
    %86 = tpu.reciprocal %85 {approx = true} : vector<2x8x1xf32> -> vector<2x8x1xf32>
    %87 = vector.broadcast %86 : vector<2x8x1xf32> to vector<2x8x8xf32>
    %88 = arith.mulf %83, %87 : vector<2x8x8xf32>
    %89 = arith.truncf %88 : vector<2x8x8xf32> to vector<2x8x8xbf16>
    %90 = arith.truncf %71 : vector<2x8x8xf32> to vector<2x8x8xbf16>
    "tpu.trace_start"() <{level = 10 : i32, message = "bqk,bkd->bqd"}> : () -> ()
    %cst_28 = arith.constant dense<0.000000e+00> : vector<2x8x8xf32>
    %91 = tpu.matmul %89, %90, %cst_28 {dimension_numbers = #tpu.dot_dimension_numbers<[2], [1], [1], [2], [0, 0, 0, 1, 1, 2], [0], [0]>} : vector<2x8x8xbf16>, vector<2x8x8xbf16>, vector<2x8x8xf32> -> vector<2x8x8xf32>
    "tpu.trace_stop"() : () -> ()
    %92 = vector.shape_cast %91 : vector<2x8x8xf32> to vector<16x8xf32>
    %c0_29 = arith.constant 0 : index
    %c8 = arith.constant 8 : index
    %93 = vector.load %arg15[%c0_29, %c8] : memref<16x32xf32, #tpu.memory_space<vmem>>, vector<16x8xf32>
    tpu.vector_store %arg15[%c0_29, %c8], %92 {strides = array<i32>} : memref<16x32xf32, #tpu.memory_space<vmem>>, vector<16x8xf32>,
    %94 = vector.extract_strided_slice %29 {offsets = [0, 16], sizes = [16, 8], strides = [1, 1]} : vector<16x96xf32> to vector<16x8xf32>
    %cst_30 = arith.constant 0.353553385 : f32
    %95 = vector.broadcast %cst_30 : f32 to vector<16x8xf32>
    %96 = arith.mulf %94, %95 : vector<16x8xf32>
    %97 = vector.shape_cast %96 : vector<16x8xf32> to vector<2x8x8xf32>
    %98 = vector.extract_strided_slice %29 {offsets = [0, 48], sizes = [16, 8], strides = [1, 1]} : vector<16x96xf32> to vector<16x8xf32>
    %99 = vector.shape_cast %98 : vector<16x8xf32> to vector<2x8x8xf32>
    %100 = vector.extract_strided_slice %29 {offsets = [0, 80], sizes = [16, 8], strides = [1, 1]} : vector<16x96xf32> to vector<16x8xf32>
    %101 = vector.shape_cast %100 : vector<16x8xf32> to vector<2x8x8xf32>
    %102 = arith.truncf %97 : vector<2x8x8xf32> to vector<2x8x8xbf16>
    %103 = arith.truncf %99 : vector<2x8x8xf32> to vector<2x8x8xbf16>
    "tpu.trace_start"() <{level = 10 : i32, message = "bqd,bkd->bqk"}> : () -> ()
    %cst_31 = arith.constant dense<0.000000e+00> : vector<2x8x8xf32>
    %104 = tpu.matmul %102, %103, %cst_31 {dimension_numbers = #tpu.dot_dimension_numbers<[2], [2], [1], [1], [0, 0, 0, 1, 1, 1], [0], [0]>} : vector<2x8x8xbf16>, vector<2x8x8xbf16>, vector<2x8x8xf32> -> vector<2x8x8xf32>
    %cst_32 = arith.constant 0xFF800000 : f32
    "tpu.trace_stop"() : () -> ()
    %105 = vector.shape_cast %33 : vector<1x8x8xi1> to vector<1x8x8xi1>
    %106 = vector.broadcast %105 : vector<1x8x8xi1> to vector<2x8x8xi1>
    %107 = vector.broadcast %cst_32 : f32 to vector<2x8x8xf32>
    %108 = arith.select %106, %104, %107 : vector<2x8x8xi1>, vector<2x8x8xf32>
    %cst_33 = arith.constant dense<0xFF800000> : vector<2x8xf32>
    %109 = vector.multi_reduction <maximumf>, %108, %cst_33 [2] : vector<2x8x8xf32> to vector<2x8xf32>
    %110 = vector.shape_cast %109 : vector<2x8xf32> to vector<2x8x1xf32>
    %111 = vector.broadcast %110 : vector<2x8x1xf32> to vector<2x8x8xf32>
    %112 = arith.subf %108, %111 : vector<2x8x8xf32>
    %113 = math.exp %112 : vector<2x8x8xf32>
    %cst_34 = arith.constant dense<0.000000e+00> : vector<2x8xf32>
    %114 = vector.multi_reduction <add>, %113, %cst_34 [2] : vector<2x8x8xf32> to vector<2x8xf32>
    %115 = vector.shape_cast %114 : vector<2x8xf32> to vector<2x8x1xf32>
    %116 = tpu.reciprocal %115 {approx = true} : vector<2x8x1xf32> -> vector<2x8x1xf32>
    %117 = vector.broadcast %116 : vector<2x8x1xf32> to vector<2x8x8xf32>
    %118 = arith.mulf %113, %117 : vector<2x8x8xf32>
    %119 = arith.truncf %118 : vector<2x8x8xf32> to vector<2x8x8xbf16>
    %120 = arith.truncf %101 : vector<2x8x8xf32> to vector<2x8x8xbf16>
    "tpu.trace_start"() <{level = 10 : i32, message = "bqk,bkd->bqd"}> : () -> ()
    %cst_35 = arith.constant dense<0.000000e+00> : vector<2x8x8xf32>
    %121 = tpu.matmul %119, %120, %cst_35 {dimension_numbers = #tpu.dot_dimension_numbers<[2], [1], [1], [2], [0, 0, 0, 1, 1, 2], [0], [0]>} : vector<2x8x8xbf16>, vector<2x8x8xbf16>, vector<2x8x8xf32> -> vector<2x8x8xf32>
    "tpu.trace_stop"() : () -> ()
    %122 = vector.shape_cast %121 : vector<2x8x8xf32> to vector<16x8xf32>
    %c0_36 = arith.constant 0 : index
    %c16 = arith.constant 16 : index
    %123 = vector.load %arg15[%c0_36, %c16] : memref<16x32xf32, #tpu.memory_space<vmem>>, vector<16x8xf32>
    tpu.vector_store %arg15[%c0_36, %c16], %122 {strides = array<i32>} : memref<16x32xf32, #tpu.memory_space<vmem>>, vector<16x8xf32>,
    %124 = vector.extract_strided_slice %29 {offsets = [0, 24], sizes = [16, 8], strides = [1, 1]} : vector<16x96xf32> to vector<16x8xf32>
    %cst_37 = arith.constant 0.353553385 : f32
    %125 = vector.broadcast %cst_37 : f32 to vector<16x8xf32>
    %126 = arith.mulf %124, %125 : vector<16x8xf32>
    %127 = vector.shape_cast %126 : vector<16x8xf32> to vector<2x8x8xf32>
    %128 = vector.extract_strided_slice %29 {offsets = [0, 56], sizes = [16, 8], strides = [1, 1]} : vector<16x96xf32> to vector<16x8xf32>
    %129 = vector.shape_cast %128 : vector<16x8xf32> to vector<2x8x8xf32>
    %130 = vector.extract_strided_slice %29 {offsets = [0, 88], sizes = [16, 8], strides = [1, 1]} : vector<16x96xf32> to vector<16x8xf32>
    %131 = vector.shape_cast %130 : vector<16x8xf32> to vector<2x8x8xf32>
    %132 = arith.truncf %127 : vector<2x8x8xf32> to vector<2x8x8xbf16>
    %133 = arith.truncf %129 : vector<2x8x8xf32> to vector<2x8x8xbf16>
    "tpu.trace_start"() <{level = 10 : i32, message = "bqd,bkd->bqk"}> : () -> ()
    %cst_38 = arith.constant dense<0.000000e+00> : vector<2x8x8xf32>
    %134 = tpu.matmul %132, %133, %cst_38 {dimension_numbers = #tpu.dot_dimension_numbers<[2], [2], [1], [1], [0, 0, 0, 1, 1, 1], [0], [0]>} : vector<2x8x8xbf16>, vector<2x8x8xbf16>, vector<2x8x8xf32> -> vector<2x8x8xf32>
    %cst_39 = arith.constant 0xFF800000 : f32
    "tpu.trace_stop"() : () -> ()
    %135 = vector.shape_cast %33 : vector<1x8x8xi1> to vector<1x8x8xi1>
    %136 = vector.broadcast %135 : vector<1x8x8xi1> to vector<2x8x8xi1>
    %137 = vector.broadcast %cst_39 : f32 to vector<2x8x8xf32>
    %138 = arith.select %136, %134, %137 : vector<2x8x8xi1>, vector<2x8x8xf32>
    %cst_40 = arith.constant dense<0xFF800000> : vector<2x8xf32>
    %139 = vector.multi_reduction <maximumf>, %138, %cst_40 [2] : vector<2x8x8xf32> to vector<2x8xf32>
    %140 = vector.shape_cast %139 : vector<2x8xf32> to vector<2x8x1xf32>
    %141 = vector.broadcast %140 : vector<2x8x1xf32> to vector<2x8x8xf32>
    %142 = arith.subf %138, %141 : vector<2x8x8xf32>
    %143 = math.exp %142 : vector<2x8x8xf32>
    %cst_41 = arith.constant dense<0.000000e+00> : vector<2x8xf32>
    %144 = vector.multi_reduction <add>, %143, %cst_41 [2] : vector<2x8x8xf32> to vector<2x8xf32>
    %145 = vector.shape_cast %144 : vector<2x8xf32> to vector<2x8x1xf32>
    %146 = tpu.reciprocal %145 {approx = true} : vector<2x8x1xf32> -> vector<2x8x1xf32>
    %147 = vector.broadcast %146 : vector<2x8x1xf32> to vector<2x8x8xf32>
    %148 = arith.mulf %143, %147 : vector<2x8x8xf32>
    %149 = arith.truncf %148 : vector<2x8x8xf32> to vector<2x8x8xbf16>
    %150 = arith.truncf %131 : vector<2x8x8xf32> to vector<2x8x8xbf16>
    "tpu.trace_start"() <{level = 10 : i32, message = "bqk,bkd->bqd"}> : () -> ()
    %cst_42 = arith.constant dense<0.000000e+00> : vector<2x8x8xf32>
    %151 = tpu.matmul %149, %150, %cst_42 {dimension_numbers = #tpu.dot_dimension_numbers<[2], [1], [1], [2], [0, 0, 0, 1, 1, 2], [0], [0]>} : vector<2x8x8xbf16>, vector<2x8x8xbf16>, vector<2x8x8xf32> -> vector<2x8x8xf32>
    "tpu.trace_stop"() : () -> ()
    %152 = vector.shape_cast %151 : vector<2x8x8xf32> to vector<16x8xf32>
    %c0_43 = arith.constant 0 : index
    %c24 = arith.constant 24 : index
    %153 = vector.load %arg15[%c0_43, %c24] : memref<16x32xf32, #tpu.memory_space<vmem>>, vector<16x8xf32>
    tpu.vector_store %arg15[%c0_43, %c24], %152 {strides = array<i32>} : memref<16x32xf32, #tpu.memory_space<vmem>>, vector<16x8xf32>,
    %c0_44 = arith.constant 0 : index
    %c0_45 = arith.constant 0 : index
    %154 = vector.load %arg15[%c0_44, %c0_45] : memref<16x32xf32, #tpu.memory_space<vmem>>, vector<16x32xf32>
    %155 = arith.truncf %154 : vector<16x32xf32> to vector<16x32xbf16>
    %c0_46 = arith.constant 0 : index
    %c0_47 = arith.constant 0 : index
    %156 = vector.load %arg6[%c0_46, %c0_47] : memref<32x32xbf16, #tpu.memory_space<vmem>>, vector<32x32xbf16>
    %cst_48 = arith.constant dense<0.000000e+00> : vector<16x32xf32>
    %157 = tpu.matmul %155, %156, %cst_48 {dimension_numbers = #tpu.dot_dimension_numbers<[1], [0], [0], [1], [0, 0, 1, 1], [], []>} : vector<16x32xbf16>, vector<32x32xbf16>, vector<16x32xf32> -> vector<16x32xf32>
    %c0_49 = arith.constant 0 : index
    %c0_50 = arith.constant 0 : index
    %158 = vector.load %arg7[%c0_49, %c0_50] : memref<1x32xf32, #tpu.memory_space<vmem>>, vector<1x32xf32>
    %159 = vector.broadcast %158 : vector<1x32xf32> to vector<16x32xf32>
    %160 = arith.addf %157, %159 : vector<16x32xf32>
    %161 = arith.addf %1, %160 : vector<16x32xf32>
    %c0_51 = arith.constant 0 : index
    %c0_52 = arith.constant 0 : index
    %162 = vector.load %arg8[%c0_51, %c0_52] : memref<1x32xf32, #tpu.memory_space<vmem>>, vector<1x32xf32>
    %c0_53 = arith.constant 0 : index
    %c0_54 = arith.constant 0 : index
    %163 = vector.load %arg9[%c0_53, %c0_54] : memref<1x32xf32, #tpu.memory_space<vmem>>, vector<1x32xf32>
    %cst_55 = arith.constant dense<0.000000e+00> : vector<16xf32>
    %164 = vector.multi_reduction <add>, %161, %cst_55 [1] : vector<16x32xf32> to vector<16xf32>
    %165 = vector.shape_cast %164 : vector<16xf32> to vector<16x1xf32>
    %cst_56 = arith.constant 3.200000e+01 : f32
    %166 = vector.broadcast %cst_56 : f32 to vector<16x1xf32>
    %167 = arith.divf %165, %166 : vector<16x1xf32>
    %168 = vector.broadcast %167 : vector<16x1xf32> to vector<16x32xf32>
    %169 = arith.subf %161, %168 : vector<16x32xf32>
    %170 = arith.mulf %169, %169 : vector<16x32xf32>
    %cst_57 = arith.constant dense<0.000000e+00> : vector<16xf32>
    %171 = vector.multi_reduction <add>, %170, %cst_57 [1] : vector<16x32xf32> to vector<16xf32>
    %172 = vector.shape_cast %171 : vector<16xf32> to vector<16x1xf32>
    %cst_58 = arith.constant 3.200000e+01 : f32
    %173 = vector.broadcast %cst_58 : f32 to vector<16x1xf32>
    %174 = arith.divf %172, %173 : vector<16x1xf32>
    %cst_59 = arith.constant 9.99999974E-6 : f32
    %175 = vector.broadcast %cst_59 : f32 to vector<16x1xf32>
    %176 = arith.addf %174, %175 : vector<16x1xf32>
    %177 = math.rsqrt %176 : vector<16x1xf32>
    %178 = vector.broadcast %177 : vector<16x1xf32> to vector<16x32xf32>
    %179 = arith.mulf %169, %178 : vector<16x32xf32>
    %180 = vector.broadcast %162 : vector<1x32xf32> to vector<16x32xf32>
    %181 = arith.mulf %179, %180 : vector<16x32xf32>
    %182 = vector.broadcast %163 : vector<1x32xf32> to vector<16x32xf32>
    %183 = arith.addf %181, %182 : vector<16x32xf32>
    %184 = arith.truncf %183 : vector<16x32xf32> to vector<16x32xbf16>
    %c0_60 = arith.constant 0 : index
    %c0_61 = arith.constant 0 : index
    %185 = vector.load %arg10[%c0_60, %c0_61] : memref<32x128xbf16, #tpu.memory_space<vmem>>, vector<32x128xbf16>
    %cst_62 = arith.constant dense<0.000000e+00> : vector<16x128xf32>
    %186 = tpu.matmul %184, %185, %cst_62 {dimension_numbers = #tpu.dot_dimension_numbers<[1], [0], [0], [1], [0, 0, 1, 1], [], []>} : vector<16x32xbf16>, vector<32x128xbf16>, vector<16x128xf32> -> vector<16x128xf32>
    %c0_63 = arith.constant 0 : index
    %c0_64 = arith.constant 0 : index
    %187 = vector.load %arg11[%c0_63, %c0_64] : memref<1x128xf32, #tpu.memory_space<vmem>>, vector<1x128xf32>
    %188 = vector.broadcast %187 : vector<1x128xf32> to vector<16x128xf32>
    %189 = arith.addf %186, %188 : vector<16x128xf32>
    %cst_65 = arith.constant 0.797884583 : f32
    %190 = vector.broadcast %cst_65 : f32 to vector<16x128xf32>
    %191 = arith.mulf %190, %189 : vector<16x128xf32>
    %192 = arith.mulf %189, %189 : vector<16x128xf32>
    %cst_66 = arith.constant 0.0356774069 : f32
    %193 = vector.broadcast %cst_66 : f32 to vector<16x128xf32>
    %194 = arith.mulf %193, %192 : vector<16x128xf32>
    %195 = arith.mulf %194, %189 : vector<16x128xf32>
    %196 = arith.addf %191, %195 : vector<16x128xf32>
    %cst_67 = arith.constant 5.000000e-01 : f32
    %197 = vector.broadcast %cst_67 : f32 to vector<16x128xf32>
    %198 = arith.mulf %197, %189 : vector<16x128xf32>
    %199 = math.tanh %196 : vector<16x128xf32>
    %cst_68 = arith.constant 1.000000e+00 : f32
    %200 = vector.broadcast %cst_68 : f32 to vector<16x128xf32>
    %201 = arith.addf %200, %199 : vector<16x128xf32>
    %202 = arith.mulf %198, %201 : vector<16x128xf32>
    %203 = arith.truncf %202 : vector<16x128xf32> to vector<16x128xbf16>
    %c0_69 = arith.constant 0 : index
    %c0_70 = arith.constant 0 : index
    %204 = vector.load %arg12[%c0_69, %c0_70] : memref<128x32xbf16, #tpu.memory_space<vmem>>, vector<128x32xbf16>
    %cst_71 = arith.constant dense<0.000000e+00> : vector<16x32xf32>
    %205 = tpu.matmul %203, %204, %cst_71 {dimension_numbers = #tpu.dot_dimension_numbers<[1], [0], [0], [1], [0, 0, 1, 1], [], []>} : vector<16x128xbf16>, vector<128x32xbf16>, vector<16x32xf32> -> vector<16x32xf32>
    %c0_72 = arith.constant 0 : index
    %c0_73 = arith.constant 0 : index
    %206 = vector.load %arg13[%c0_72, %c0_73] : memref<1x32xf32, #tpu.memory_space<vmem>>, vector<1x32xf32>
    %207 = vector.broadcast %206 : vector<1x32xf32> to vector<16x32xf32>
    %208 = arith.addf %205, %207 : vector<16x32xf32>
    %209 = arith.addf %161, %208 : vector<16x32xf32>
    %210 = vector.shape_cast %209 : vector<16x32xf32> to vector<2x8x32xf32>
    %c0_74 = arith.constant 0 : index
    %c0_75 = arith.constant 0 : index
    %c0_76 = arith.constant 0 : index
    %211 = vector.load %arg14[%c0_74, %c0_75, %c0_76] : memref<2x8x32xf32, #tpu.memory_space<vmem>>, vector<2x8x32xf32>
    tpu.vector_store %arg14[%c0_74, %c0_75, %c0_76], %210 {strides = array<i32>} : memref<2x8x32xf32, #tpu.memory_space<vmem>>, vector<2x8x32xf32>,
    return
  }
  func.func @transform_0(%arg0: i32) -> (i32, i32, i32) {
    %c0_i32 = arith.constant 0 : i32
    %c0_i32_0 = arith.constant 0 : i32
    %c0_i32_1 = arith.constant 0 : i32
    return %arg0, %c0_i32, %c0_i32_0 : i32, i32, i32
  }
  func.func @transform_1(%arg0: i32) -> (i32, i32) {
    %c0_i32 = arith.constant 0 : i32
    %c0_i32_0 = arith.constant 0 : i32
    %c0_i32_1 = arith.constant 0 : i32
    return %c0_i32, %c0_i32_0 : i32, i32
  }
  func.func @transform_2(%arg0: i32) -> (i32, i32) {
    %c0_i32 = arith.constant 0 : i32
    %c0_i32_0 = arith.constant 0 : i32
    %c0_i32_1 = arith.constant 0 : i32
    return %c0_i32, %c0_i32_0 : i32, i32
  }
  func.func @transform_3(%arg0: i32) -> (i32, i32) {
    %c0_i32 = arith.constant 0 : i32
    %c0_i32_0 = arith.constant 0 : i32
    %c0_i32_1 = arith.constant 0 : i32
    return %c0_i32, %c0_i32_0 : i32, i32
  }
  func.func @transform_4(%arg0: i32) -> (i32, i32) {
    %c0_i32 = arith.constant 0 : i32
    %c0_i32_0 = arith.constant 0 : i32
    %c0_i32_1 = arith.constant 0 : i32
    return %c0_i32, %c0_i32_0 : i32, i32
  }
  func.func @transform_5(%arg0: i32) -> (i32, i32) {
    %c0_i32 = arith.constant 0 : i32
    %c0_i32_0 = arith.constant 0 : i32
    %c0_i32_1 = arith.constant 0 : i32
    return %c0_i32, %c0_i32_0 : i32, i32
  }
  func.func @transform_6(%arg0: i32) -> (i32, i32) {
    %c0_i32 = arith.constant 0 : i32
    %c0_i32_0 = arith.constant 0 : i32
    %c0_i32_1 = arith.constant 0 : i32
    return %c0_i32, %c0_i32_0 : i32, i32
  }
  func.func @transform_7(%arg0: i32) -> (i32, i32) {
    %c0_i32 = arith.constant 0 : i32
    %c0_i32_0 = arith.constant 0 : i32
    %c0_i32_1 = arith.constant 0 : i32
    return %c0_i32, %c0_i32_0 : i32, i32
  }
  func.func @transform_8(%arg0: i32) -> (i32, i32) {
    %c0_i32 = arith.constant 0 : i32
    %c0_i32_0 = arith.constant 0 : i32
    %c0_i32_1 = arith.constant 0 : i32
    return %c0_i32, %c0_i32_0 : i32, i32
  }
  func.func @transform_9(%arg0: i32) -> (i32, i32) {
    %c0_i32 = arith.constant 0 : i32
    %c0_i32_0 = arith.constant 0 : i32
    %c0_i32_1 = arith.constant 0 : i32
    return %c0_i32, %c0_i32_0 : i32, i32
  }
  func.func @transform_10(%arg0: i32) -> (i32, i32) {
    %c0_i32 = arith.constant 0 : i32
    %c0_i32_0 = arith.constant 0 : i32
    %c0_i32_1 = arith.constant 0 : i32
    return %c0_i32, %c0_i32_0 : i32, i32
  }
  func.func @transform_11(%arg0: i32) -> (i32, i32) {
    %c0_i32 = arith.constant 0 : i32
    %c0_i32_0 = arith.constant 0 : i32
    %c0_i32_1 = arith.constant 0 : i32
    return %c0_i32, %c0_i32_0 : i32, i32
  }
  func.func @transform_12(%arg0: i32) -> (i32, i32) {
    %c0_i32 = arith.constant 0 : i32
    %c0_i32_0 = arith.constant 0 : i32
    %c0_i32_1 = arith.constant 0 : i32
    return %c0_i32, %c0_i32_0 : i32, i32
  }
  func.func @transform_13(%arg0: i32) -> (i32, i32, i32) {
    %c0_i32 = arith.constant 0 : i32
    %c0_i32_0 = arith.constant 0 : i32
    %c0_i32_1 = arith.constant 0 : i32
    return %arg0, %c0_i32, %c0_i32_0 : i32, i32, i32
  }
}

</mosaic_0001>

<bundles_post_ra>
// kernel: tpu_custom_call.1
= control target key start
LH: loop header
LB: loop body
LE: loop exit
PB: predicated region body
PF: predicated region fallthrough
CT: control target
= control target key end

     0   :  { %vm50_vm0 = vcmask 261120   ;;  %s2156_s0 = inlined_call_operand.vmem [shape: f32[2,8,32], index: 0, kind: input, shape index: {}]   ;;  %s2157_s1 = inlined_call_operand.vmem [shape: f32[1,32], index: 1, kind: input, shape index: {}]   ;;  %s2158_s2 = inlined_call_operand.vmem [shape: f32[1,32], index: 2, kind: input, shape index: {}]   ;;  %s2159_s3 = inlined_call_operand.vmem [shape: bf16[32,96], index: 3, kind: input, shape index: {}]   ;;  %s2160_s4 = inlined_call_operand.vmem [shape: f32[1,96], index: 4, kind: input, shape index: {}]   ;;  %s2161_s5 = inlined_call_operand.vmem [shape: bf16[32,32], index: 5, kind: input, shape index: {}]   ;;  %s2162_s6 = inlined_call_operand.vmem [shape: f32[1,32], index: 6, kind: input, shape index: {}]   ;;  %s2163_s7 = inlined_call_operand.vmem [shape: f32[1,32], index: 7, kind: input, shape index: {}]   ;;  %s2164_s8 = inlined_call_operand.vmem [shape: f32[1,32], index: 8, kind: input, shape index: {}]   ;;  %s2165_s9 = inlined_call_operand.vmem [shape: bf16[32,128], index: 9, kind: input, shape index: {}]   ;;  %s2166_s10 = inlined_call_operand.vmem [shape: f32[1,128], index: 10, kind: input, shape index: {}]   ;;  %s2167_s11 = inlined_call_operand.vmem [shape: bf16[128,32], index: 11, kind: input, shape index: {}]   ;;  %s2168_s12 = inlined_call_operand.vmem [shape: f32[1,32], index: 12, kind: input, shape index: {}]   ;;  %s2169_s13 = inlined_call_operand.hbm [shape: f32[2,8,32], index: 13, kind: output, shape index: {}]  }
   0x1   :  { %v1857_v0 = vld [vmem:[%s2156_s0] sm:$0xff]  ;;  %v1862_v1 = vld [vmem:[%s2156_s0 + $0x8] sm:$0xff] }
   0x2   :  { %v51_v2 = vsel %vm50_vm0, %v1857_v0, 0.0  ;;  %v54_v3 = vsel %vm50_vm0, %v1862_v1, 0.0 }
   0x3   :  { %52 = vadd.xlane.f32.xlu0 %v51_v2 }
   0x7   :  { %55 = vadd.xlane.f32.xlu0 %v54_v3 }
   0x8   :  { %18 = vsyncpa [#allocation4], 0  ;;  %v1684_v14 = vld [vmem:[%s2159_s3] sm:$0xff]   ;;  %v1766_v15 = vmov 0.0   ;;  %v1685_v16 = vld [vmem:[%s2159_s3 + $0x8] sm:$0xff]   ;;  %vm1767_vm1 = vmmov 0   ;;  %v162_v51 = vlaneseq }
   0x9   :  { %1526 = vmatprep.subr.bf16.mxu0 %v1766_v15  ;;  %1546 = vmatprep.subr.bf16.mxu1 %v1766_v15  ;;  %v1435_v25 = vld [vmem:[%s2157_s1] ss:$0 sm:$0xff]  ;;  %s1768_s1 = smov 96   ;;  %vm176_vm2 = vcmask 64512   ;;  %vm305_vm4 = vcmask 1043456   ;;  %s1771_s20 = smov 120  }
   0xa   :  { %1527 = vmatpush3.bf16.msra.mxu0 %v1684_v14  ;;  %1530 = vmatprep.mubr.msk.bf16.mxu0 %vm1767_vm1, %v1766_v15  ;;  %v1436_v29 = vld [vmem:[%s2158_s2] ss:$0 sm:$0xff]  ;;  %v163_v52 = vshrl.u32 %v162_v51, 7  ;;  %v165_v53 = vand.u32 127, %v162_v51  ;;  %s1769_s2 = smov 64   ;;  %s1772_s21 = smov 56  }
   0xb   :  { %1528 = vmatprep.subr.bf16.mxu0 %v1766_v15  ;;  %1548 = vmatprep.mubr.msk.bf16.mxu1 %vm1767_vm1, %v1766_v15  ;;  %v1437_v34 = vld [vmem:[%s2160_s4] ss:$0 sm:$0xff]  ;;  %s1770_s4 = smov 88   ;;  %s1773_s22 = smov 80   ;;  %vm631_vm5 = vcmask 130112   ;;  %vm864_vm6 = vcmask 195712  }
   0xc   :  { %vm1920_vm3 = vcmp.ge.s32.totalorder %v163_v52, %v165_v53  ;;  %s1774_s23 = smov 112   ;;  %s1775_s24 = smov 48   ;;  %vm1097_vm7 = vcmask 261312  }
   0xd   :  { %s1776_s25 = smov 72   ;;  %s1777_s26 = smov 104  }
   0xe   :  { %1529 = vmatpush3.bf16.msra.mxu0 %v1685_v16  ;;  %s1778_s27 = smov 40   ;;  %s1779_s28 = smov 8  }
   0xf   :  { %1534 = vmatprep.subr.bf16.mxu0 %v1766_v15  ;;  %s1780_s0 = smov 16   ;;  %s1781_s15 = smov 24  }
  0x90   :  { %v53_v4 = vpop.xlane.xlu0 %52 }
  0x91   :  { %v58_v5 = vmul.f32 0.03125, %v53_v4 }
  0x93   :  { %v60_v6 = vsub.f32 %v1857_v0, %v58_v5 }
  0x94   :  { %v56_v7 = vpop.xlane.xlu0 %55 }
  0x95   :  { %v59_v8 = vmul.f32 0.03125, %v56_v7  ;;  %v62_v9 = vmul.f32 %v60_v6, %v60_v6 }
  0x97   :  { %v61_v10 = vsub.f32 %v1862_v1, %v59_v8  ;;  %v64_v11 = vsel %vm50_vm0, %v62_v9, 0.0 }
  0x98   :  { %65 = vadd.xlane.f32.xlu1 %v64_v11 }
  0x99   :  { %v63_v12 = vmul.f32 %v61_v10, %v61_v10 }
  0x9b   :  { %v67_v13 = vsel %vm50_vm0, %v63_v12, 0.0 }
  0x9c   :  { %68 = vadd.xlane.f32.xlu1 %v67_v13 }
 0x125   :  { %v66_v17 = vpop.xlane.xlu1 %65 }
 0x126   :  { %v70_v18 = vmul.f32 0.03125, %v66_v17 }
 0x128   :  { %v72_v19 = vadd.f32 1e-05, %v70_v18 }
 0x129   :  { %v69_v20 = vpop.xlane.xlu1 %68 }
 0x12a   :  { %1698 = vrsqrt.f32 %v72_v19  ;;  %v71_v21 = vmul.f32 0.03125, %v69_v20 }
 0x12c   :  { %v73_v22 = vadd.f32 1e-05, %v71_v21 }
 0x12e   :  { %1700 = vrsqrt.f32 %v73_v22 }
 0x134   :  { %v1699_v23 = vpop.eup %1698 }
 0x135   :  { %v76_v24 = vmul.f32 %v1699_v23, %v60_v6 }
 0x137   :  { %v84_v28 = vmul.f32 %v1435_v25, %v76_v24 }
 0x138   :  { %v1701_v26 = vpop.eup %1700 }
 0x139   :  { %v77_v27 = vmul.f32 %v1701_v26, %v61_v10  ;;  %v92_v31 = vadd.f32 %v1436_v29, %v84_v28 }
 0x13b   :  { %v85_v30 = vmul.f32 %v1435_v25, %v77_v27 }
 0x13d   :  { %v93_v32 = vadd.f32 %v1436_v29, %v85_v30 }
 0x13f   :  { %v94_v33 = vpack.c.bf16 %v93_v32, %v92_v31 }
 0x141   :  { %1531 = vmatmul.mubr.msk.bf16.vlgmr.msra.gmra.mrb[0].mxu0 %vm50_vm0, %v94_v33 }
 0x142   :  { %1536 = vmatprep.mubr.msk.bf16.mxu0 %vm1767_vm1, %v1766_v15 }
 0x214   :  { %v155_v35 = vpop.f32.mrb[0].mxu0 }
 0x215   :  { %v156_v36 = vadd.f32 %v1437_v34, %v155_v35  ;;  %v1532_v37 = vpop.f32.mrb[1].mxu0 }
 0x216   :  { %v158_v38 = vpop.f32.mrb[2].mxu0 }
 0x217   :  { %v1898_v39 = vpack.c.bf16 %v156_v36, %v156_v36  ;;  %v159_v40 = vadd.f32 %v1437_v34, %v158_v38  ;;  %v1533_v41 = vpop.f32.mrb[3].mxu0  ;;  %v167_v45 = vmul.f32 0.35355338, %v156_v36 }
 0x219   :  { %v1900_v42 = vpack.c.bf16 %v159_v40, %v159_v40  ;;  %174 = vrot.lane.b32.xlu0 %v1898_v39, %s1768_s1  ;;  %v1906_v47 = vpack.c.bf16 %v167_v45, %v167_v45  ;;  %v168_v49 = vmul.f32 0.35355338, %v159_v40 }
 0x21b   :  { %224 = vrot.lane.b32.xlu1 %v1900_v42, %s1768_s1  ;;  %v1914_v50 = vpack.c.bf16 %v168_v49, %v168_v49 }
 0x28b   :  { %v175_v43 = vpop.permute.xlu0 %174 }
 0x28c   :  { %v181_v44 = vsel %vm176_vm2, %v175_v43, 0 }
 0x28d   :  { %1535 = vmatpush3.bf16.xpose.msra.mxu0 %v181_v44  ;;  %v225_v46 = vpop.permute.xlu1 %224 }
 0x28e   :  { %1540 = vmatprep.subr.bf16.mxu0 %v1766_v15  ;;  %v230_v48 = vsel %vm176_vm2, %v225_v46, 0 }
 0x294   :  { %1537 = vmatmul.mubr.msk.bf16.vlgmr.msra.gmra.mrb[4].mxu0 %vm176_vm2, %v1906_v47 }
 0x295   :  { %1541 = vmatpush3.bf16.xpose.msra.mxu0 %v230_v48  ;;  %1542 = vmatprep.mubr.msk.bf16.mxu0 %vm1767_vm1, %v1766_v15 }
 0x296   :  { %1552 = vmatprep.subr.bf16.mxu0 %v1766_v15 }
 0x29c   :  { %1543 = vmatmul.mubr.msk.bf16.vlgmr.msra.gmra.mrb[8].mxu0 %vm176_vm2, %v1914_v50 }
 0x29d   :  { %1554 = vmatprep.mubr.msk.bf16.mxu0 %vm1767_vm1, %v1766_v15 }
 0x367   :  { %v217_v55 = vpop.f32.mrb[4].mxu0 }
 0x368   :  { %v274_v56 = vsel %vm1920_vm3, %v217_v55, -inf  ;;  %v1538_v57 = vpop.f32.mrb[5].mxu0 }
 0x369   :  { %v220_v58 = vpop.f32.mrb[6].mxu0  ;;  %v276_v59 = vsel %vm176_vm2, %v274_v56, -inf }
 0x36a   :  { %277 = vmax.xlane.f32.xlu1 %v276_v59  ;;  %v1539_v60 = vpop.f32.mrb[7].mxu0 }
 0x36f   :  { %v266_v61 = vpop.f32.mrb[8].mxu0 }
 0x370   :  { %v275_v62 = vsel %vm1920_vm3, %v266_v61, -inf  ;;  %v1544_v63 = vpop.f32.mrb[9].mxu0 }
 0x371   :  { %v269_v2 = vpop.f32.mrb[10].mxu0  ;;  %v279_v3 = vsel %vm176_vm2, %v275_v62, -inf }
 0x372   :  { %280 = vmax.xlane.f32.xlu0 %v279_v3  ;;  %v1545_v4 = vpop.f32.mrb[11].mxu0 }
 0x37b   :  { %349 = vrot.lane.b32.xlu1 %v1900_v42, %s1769_s2 }
 0x37f   :  { %402 = vrot.lane.b32.xlu1 %v1898_v39, %s1770_s4 }
 0x3f7   :  { %v278_v5 = vpop.xlane.xlu1 %277 }
 0x3f8   :  { %v282_v6 = vsub.f32 %v274_v56, %v278_v5 }
 0x3fa   :  { %v284_v7 = vmul.f32 1.442695, %v282_v6 }
 0x3fb   :  { %v350_v8 = vpop.permute.xlu1 %349 }
 0x3fc   :  { %1702 = vpow2.f32 %v284_v7  ;;  %v355_v9 = vsel %vm305_vm4, %v350_v8, 0 }
 0x3fd   :  { %1553 = vmatpush3.bf16.msra.mxu0 %v355_v9 }
 0x3fe   :  { %1564 = vmatprep.subr.bf16.mxu0 %v1766_v15 }
 0x3ff   :  { %v281_v10 = vpop.xlane.xlu0 %280  ;;  %v403_v19 = vpop.permute.xlu1 %402 }
 0x400   :  { %v283_v11 = vsub.f32 %v275_v62, %v281_v10  ;;  %v408_v26 = vsel %vm176_vm2, %v403_v19, 0 }
 0x402   :  { %v286_v12 = vmul.f32 1.442695, %v283_v11 }
 0x404   :  { %1704 = vpow2.f32 %v286_v12 }
 0x406   :  { %v1703_v13 = vpop.eup %1702 }
 0x407   :  { %v288_v14 = vsel %vm176_vm2, %v1703_v13, 0.0 }
 0x408   :  { %289 = vadd.xlane.f32.xlu0 %v288_v14 }
 0x40e   :  { %v1705_v16 = vpop.eup %1704 }
 0x40f   :  { %v291_v17 = vsel %vm176_vm2, %v1705_v16, 0.0 }
 0x410   :  { %292 = vadd.xlane.f32.xlu1 %v291_v17 }
 0x41e   :  { %300 = vrot.lane.b32.xlu0 %v1898_v39, %s1769_s2 }
 0x421   :  { %453 = vrot.lane.b32.xlu1 %v1900_v42, %s1770_s4 }
 0x422   :  { %400 = vrot.lane.b32.xlu0 %v1906_v47, %s1771_s20 }
 0x425   :  { %451 = vrot.lane.b32.xlu1 %v1914_v50, %s1771_s20 }
 0x495   :  { %v290_v18 = vpop.xlane.xlu0 %289 }
 0x496   :  { %1706 = vrcp.f32 %v290_v18 }
 0x499   :  { %v301_v20 = vpop.permute.xlu0 %300 }
 0x49a   :  { %v307_v21 = vsel %vm305_vm4, %v301_v20, 0 }
 0x49b   :  { %1547 = vmatpush3.bf16.msra.mxu1 %v307_v21 }
 0x49c   :  { %1558 = vmatprep.subr.bf16.mxu1 %v1766_v15 }
 0x49d   :  { %v293_v22 = vpop.xlane.xlu1 %292  ;;  %v401_v31 = vpop.permute.xlu0 %400 }
 0x49e   :  { %1708 = vrcp.f32 %v293_v22 }
 0x4a0   :  { %v1707_v23 = vpop.eup %1706 }
 0x4a1   :  { %v296_v24 = vmul.f32 %v1707_v23, %v1703_v13  ;;  %v454_v29 = vpop.permute.xlu1 %453 }
 0x4a2   :  { %v459_v32 = vsel %vm176_vm2, %v454_v29, 0 }
 0x4a3   :  { %v298_v25 = vpack.c.bf16 %v296_v24, %v296_v24 }
 0x4a5   :  { %1549 = vmatmul.mubr.msk.bf16.vlgmr.msra.gmra.mrb[0].mxu1 %vm176_vm2, %v298_v25  ;;  %v452_v33 = vpop.permute.xlu1 %451 }
 0x4a6   :  { %1559 = vmatpush3.bf16.xpose.msra.mxu1 %v408_v26  ;;  %1560 = vmatprep.mubr.msk.bf16.mxu1 %vm1767_vm1, %v1766_v15 }
 0x4a7   :  { %1570 = vmatprep.subr.bf16.mxu1 %v1766_v15 }
 0x4a8   :  { %v1709_v27 = vpop.eup %1708 }
 0x4a9   :  { %v297_v28 = vmul.f32 %v1709_v27, %v1705_v16 }
 0x4ab   :  { %v299_v30 = vpack.c.bf16 %v297_v28, %v297_v28 }
 0x4ad   :  { %1555 = vmatmul.mubr.msk.bf16.vlgmr.msra.gmra.mrb[12].mxu0 %vm176_vm2, %v299_v30  ;;  %1561 = vmatmul.mubr.msk.bf16.vlgmr.msra.gmra.mrb[4].mxu1 %vm176_vm2, %v401_v31 }
 0x4ae   :  { %1565 = vmatpush3.bf16.xpose.msra.mxu0 %v459_v32  ;;  %1566 = vmatprep.mubr.msk.bf16.mxu0 %vm1767_vm1, %v1766_v15 }
 0x4af   :  { %1576 = vmatprep.subr.bf16.mxu0 %v1766_v15  ;;  %1572 = vmatprep.mubr.msk.bf16.mxu1 %vm1767_vm1, %v1766_v15 }
 0x4b5   :  { %1567 = vmatmul.mubr.msk.bf16.vlgmr.msra.gmra.mrb[16].mxu0 %vm176_vm2, %v452_v33 }
 0x4b6   :  { %1578 = vmatprep.mubr.msk.bf16.mxu0 %vm1767_vm1, %v1766_v15 }
 0x578   :  { %v343_v34 = vpop.f32.mrb[0].mxu1 }
 0x579   :  { %397 = vst.msk [vmem:[#allocation2] sm:$0xff] %vm176_vm2, %v343_v34  ;;  %v1550_v35 = vpop.f32.mrb[1].mxu1 }
 0x57a   :  { %v346_v36 = vpop.f32.mrb[2].mxu1 }
 0x57b   :  { %v1551_v37 = vpop.f32.mrb[3].mxu1 }
 0x580   :  { %v391_v38 = vpop.f32.mrb[12].mxu0  ;;  %v444_v40 = vpop.f32.mrb[4].mxu1 }
 0x581   :  { %398 = vst.msk [vmem:[#allocation2 + $0x8] sm:$0xff] %vm176_vm2, %v391_v38  ;;  %v501_v41 = vsel %vm1920_vm3, %v444_v40, -inf  ;;  %v1556_v43 = vpop.f32.mrb[13].mxu0  ;;  %v1562_v44 = vpop.f32.mrb[5].mxu1 }
 0x582   :  { %v394_v45 = vpop.f32.mrb[14].mxu0  ;;  %v447_v46 = vpop.f32.mrb[6].mxu1  ;;  %v503_v48 = vsel %vm176_vm2, %v501_v41, -inf }
 0x583   :  { %504 = vmax.xlane.f32.xlu0 %v503_v48  ;;  %v1557_v49 = vpop.f32.mrb[15].mxu0  ;;  %v1563_v51 = vpop.f32.mrb[7].mxu1 }
 0x588   :  { %v495_v52 = vpop.f32.mrb[16].mxu0 }
 0x589   :  { %v502_v53 = vsel %vm1920_vm3, %v495_v52, -inf  ;;  %v1568_v55 = vpop.f32.mrb[17].mxu0 }
 0x58a   :  { %v498_v56 = vpop.f32.mrb[18].mxu0  ;;  %v506_v57 = vsel %vm176_vm2, %v502_v53, -inf }
 0x58b   :  { %507 = vmax.xlane.f32.xlu1 %v506_v57  ;;  %v1569_v58 = vpop.f32.mrb[19].mxu0 }
 0x59c   :  { %575 = vrot.lane.b32.xlu1 %v1900_v42, %s1772_s21 }
 0x5a0   :  { %636 = vrot.lane.b32.xlu1 %v1898_v39, %s1773_s22 }
 0x5a4   :  { %686 = vrot.lane.b32.xlu1 %v1900_v42, %s1773_s22 }
 0x5a8   :  { %684 = vrot.lane.b32.xlu1 %v1914_v50, %s1774_s23 }
 0x610   :  { %v505_v59 = vpop.xlane.xlu0 %504 }
 0x611   :  { %v509_v60 = vsub.f32 %v501_v41, %v505_v59 }
 0x613   :  { %v511_v61 = vmul.f32 1.442695, %v509_v60 }
 0x615   :  { %1710 = vpow2.f32 %v511_v61 }
 0x618   :  { %v508_v62 = vpop.xlane.xlu1 %507 }
 0x619   :  { %v510_v63 = vsub.f32 %v502_v53, %v508_v62 }
 0x61b   :  { %v513_v2 = vmul.f32 1.442695, %v510_v63 }
 0x61c   :  { %v576_v3 = vpop.permute.xlu1 %575 }
 0x61d   :  { %1712 = vpow2.f32 %v513_v2  ;;  %v581_v4 = vsel %vm305_vm4, %v576_v3, 0 }
 0x61e   :  { %1577 = vmatpush3.bf16.msra.mxu0 %v581_v4 }
 0x61f   :  { %v1711_v5 = vpop.eup %1710  ;;  %1588 = vmatprep.subr.bf16.mxu0 %v1766_v15 }
 0x620   :  { %v515_v6 = vsel %vm176_vm2, %v1711_v5, 0.0  ;;  %v637_v17 = vpop.permute.xlu1 %636 }
 0x621   :  { %516 = vadd.xlane.f32.xlu0 %v515_v6  ;;  %v642_v21 = vsel %vm176_vm2, %v637_v17, 0 }
 0x624   :  { %v687_v20 = vpop.permute.xlu1 %686 }
 0x625   :  { %v692_v23 = vsel %vm176_vm2, %v687_v20, 0 }
 0x627   :  { %v1713_v7 = vpop.eup %1712 }
 0x628   :  { %v518_v8 = vsel %vm176_vm2, %v1713_v7, 0.0  ;;  %v685_v25 = vpop.permute.xlu1 %684 }
 0x629   :  { %519 = vadd.xlane.f32.xlu0 %v518_v8 }
 0x63f   :  { %527 = vrot.lane.b32.xlu0 %v1898_v39, %s1772_s21 }
 0x643   :  { %634 = vrot.lane.b32.xlu0 %v1906_v47, %s1774_s23 }
 0x6ae   :  { %v517_v9 = vpop.xlane.xlu0 %516 }
 0x6af   :  { %1714 = vrcp.f32 %v517_v9 }
 0x6b6   :  { %v520_v10 = vpop.xlane.xlu0 %519 }
 0x6b7   :  { %1716 = vrcp.f32 %v520_v10 }
 0x6b9   :  { %v1715_v11 = vpop.eup %1714 }
 0x6ba   :  { %v523_v12 = vmul.f32 %v1715_v11, %v1711_v5  ;;  %v528_v13 = vpop.permute.xlu0 %527 }
 0x6bb   :  { %v533_v14 = vsel %vm305_vm4, %v528_v13, 0 }
 0x6bc   :  { %1571 = vmatpush3.bf16.msra.mxu1 %v533_v14  ;;  %v525_v16 = vpack.c.bf16 %v523_v12, %v523_v12 }
 0x6bd   :  { %1582 = vmatprep.subr.bf16.mxu1 %v1766_v15 }
 0x6be   :  { %v635_v24 = vpop.permute.xlu0 %634 }
 0x6bf   :  { %1573 = vmatmul.mubr.msk.bf16.vlgmr.msra.gmra.mrb[8].mxu1 %vm176_vm2, %v525_v16 }
 0x6c0   :  { %1584 = vmatprep.mubr.msk.bf16.mxu1 %vm1767_vm1, %v1766_v15 }
 0x6c1   :  { %v1717_v18 = vpop.eup %1716 }
 0x6c2   :  { %v524_v19 = vmul.f32 %v1717_v18, %v1713_v7 }
 0x6c4   :  { %v526_v22 = vpack.c.bf16 %v524_v19, %v524_v19 }
 0x6c5   :  { %1583 = vmatpush3.bf16.xpose.msra.mxu1 %v642_v21 }
 0x6c6   :  { %1579 = vmatmul.mubr.msk.bf16.vlgmr.msra.gmra.mrb[20].mxu0 %vm176_vm2, %v526_v22  ;;  %1594 = vmatprep.subr.bf16.mxu1 %v1766_v15 }
 0x6c7   :  { %1589 = vmatpush3.bf16.xpose.msra.mxu0 %v692_v23  ;;  %1590 = vmatprep.mubr.msk.bf16.mxu0 %vm1767_vm1, %v1766_v15 }
 0x6c8   :  { %1600 = vmatprep.subr.bf16.mxu0 %v1766_v15 }
 0x6cc   :  { %1585 = vmatmul.mubr.msk.bf16.vlgmr.msra.gmra.mrb[12].mxu1 %vm176_vm2, %v635_v24 }
 0x6cd   :  { %1596 = vmatprep.mubr.msk.bf16.mxu1 %vm1767_vm1, %v1766_v15 }
 0x6ce   :  { %1591 = vmatmul.mubr.msk.bf16.vlgmr.msra.gmra.mrb[24].mxu0 %vm176_vm2, %v685_v25 }
 0x6cf   :  { %1602 = vmatprep.mubr.msk.bf16.mxu0 %vm1767_vm1, %v1766_v15 }
 0x792   :  { %v1994_v26 = vpop.f32.mrb[8].mxu1 }
 0x793   :  { %v1574_v27 = vpop.f32.mrb[9].mxu1 }
 0x794   :  { %v572_v28 = vpop.f32.mrb[10].mxu1 }
 0x795   :  { %v1575_v29 = vpop.f32.mrb[11].mxu1 }
 0x799   :  { %v1996_v30 = vpop.f32.mrb[20].mxu0 }
 0x79a   :  { %v1580_v31 = vpop.f32.mrb[21].mxu0 }
 0x79b   :  { %v620_v32 = vpop.f32.mrb[22].mxu0 }
 0x79c   :  { %v1581_v33 = vpop.f32.mrb[23].mxu0 }
 0x79f   :  { %v678_v34 = vpop.f32.mrb[12].mxu1 }
 0x7a0   :  { %v734_v35 = vsel %vm1920_vm3, %v678_v34, -inf  ;;  %v1586_v36 = vpop.f32.mrb[13].mxu1 }
 0x7a1   :  { %v681_v37 = vpop.f32.mrb[14].mxu1  ;;  %v728_v38 = vpop.f32.mrb[24].mxu0  ;;  %v736_v40 = vsel %vm176_vm2, %v734_v35, -inf }
 0x7a2   :  { %v735_v41 = vsel %vm1920_vm3, %v728_v38, -inf  ;;  %737 = vmax.xlane.f32.xlu0 %v736_v40  ;;  %v1587_v43 = vpop.f32.mrb[15].mxu1  ;;  %v1592_v44 = vpop.f32.mrb[25].mxu0 }
 0x7a3   :  { %v731_v45 = vpop.f32.mrb[26].mxu0  ;;  %v739_v46 = vsel %vm176_vm2, %v735_v41, -inf }
 0x7a4   :  { %740 = vmax.xlane.f32.xlu1 %v739_v46  ;;  %v1593_v48 = vpop.f32.mrb[27].mxu0 }
 0x7b5   :  { %808 = vrot.lane.b32.xlu1 %v1900_v42, %s1775_s24 }
 0x7b9   :  { %869 = vrot.lane.b32.xlu1 %v1898_v39, %s1776_s25 }
 0x7bd   :  { %919 = vrot.lane.b32.xlu1 %v1900_v42, %s1776_s25 }
 0x7c1   :  { %917 = vrot.lane.b32.xlu1 %v1914_v50, %s1777_s26 }
 0x82f   :  { %v738_v49 = vpop.xlane.xlu0 %737 }
 0x830   :  { %v742_v51 = vsub.f32 %v734_v35, %v738_v49 }
 0x831   :  { %v741_v52 = vpop.xlane.xlu1 %740 }
 0x832   :  { %v744_v53 = vmul.f32 1.442695, %v742_v51  ;;  %v743_v55 = vsub.f32 %v735_v41, %v741_v52 }
 0x834   :  { %1718 = vpow2.f32 %v744_v53  ;;  %v746_v56 = vmul.f32 1.442695, %v743_v55 }
 0x835   :  { %v809_v57 = vpop.permute.xlu1 %808 }
 0x836   :  { %1720 = vpow2.f32 %v746_v56  ;;  %v814_v58 = vsel %vm305_vm4, %v809_v57, 0 }
 0x837   :  { %1601 = vmatpush3.bf16.msra.mxu0 %v814_v58 }
 0x838   :  { %1612 = vmatprep.subr.bf16.mxu0 %v1766_v15 }
 0x839   :  { %v870_v5 = vpop.permute.xlu1 %869 }
 0x83d   :  { %v920_v10 = vpop.permute.xlu1 %919 }
 0x83e   :  { %v1719_v59 = vpop.eup %1718  ;;  %v925_v12 = vsel %vm176_vm2, %v920_v10, 0 }
 0x83f   :  { %v748_v60 = vsel %vm176_vm2, %v1719_v59, 0.0 }
 0x840   :  { %v1721_v61 = vpop.eup %1720  ;;  %749 = vadd.xlane.f32.xlu0 %v748_v60 }
 0x841   :  { %v751_v50 = vsel %vm176_vm2, %v1721_v61, 0.0  ;;  %v918_v14 = vpop.permute.xlu1 %917 }
 0x844   :  { %752 = vadd.xlane.f32.xlu0 %v751_v50 }
 0x85a   :  { %760 = vrot.lane.b32.xlu0 %v1898_v39, %s1775_s24 }
 0x85e   :  { %867 = vrot.lane.b32.xlu0 %v1906_v47, %s1777_s26  ;;  %v875_v47 = vsel %vm176_vm2, %v870_v5, 0 }
 0x8cd   :  { %v750_v62 = vpop.xlane.xlu0 %749 }
 0x8ce   :  { %1722 = vrcp.f32 %v750_v62 }
 0x8d1   :  { %v753_v63 = vpop.xlane.xlu0 %752 }
 0x8d2   :  { %1724 = vrcp.f32 %v753_v63  ;;  %v1686_v63 = vld [vmem:[%s2161_s5] sm:$0xff]  }
 0x8d5   :  { %v761_v2 = vpop.permute.xlu0 %760 }
 0x8d6   :  { %v766_v3 = vsel %vm305_vm4, %v761_v2, 0  ;;  %v1687_v2 = vld [vmem:[%s2161_s5 + $0x8] sm:$0xff]  }
 0x8d7   :  { %1595 = vmatpush3.bf16.msra.mxu1 %v766_v3 }
 0x8d8   :  { %v1723_v4 = vpop.eup %1722  ;;  %1606 = vmatprep.subr.bf16.mxu1 %v1766_v15 }
 0x8d9   :  { %v756_v6 = vmul.f32 %v1723_v4, %v1719_v59  ;;  %v868_v13 = vpop.permute.xlu0 %867 }
 0x8db   :  { %v758_v7 = vpack.c.bf16 %v756_v6, %v756_v6 }
 0x8dc   :  { %v1725_v8 = vpop.eup %1724 }
 0x8dd   :  { %v757_v9 = vmul.f32 %v1725_v8, %v1721_v61  ;;  %1597 = vmatmul.mubr.msk.bf16.vlgmr.msra.gmra.mrb[16].mxu1 %vm176_vm2, %v758_v7 }
 0x8de   :  { %1608 = vmatprep.mubr.msk.bf16.mxu1 %vm1767_vm1, %v1766_v15 }
 0x8df   :  { %v759_v11 = vpack.c.bf16 %v757_v9, %v757_v9 }
 0x8e0   :  { %1607 = vmatpush3.bf16.xpose.msra.mxu1 %v875_v47 }
 0x8e1   :  { %1603 = vmatmul.mubr.msk.bf16.vlgmr.msra.gmra.mrb[28].mxu0 %vm176_vm2, %v759_v11  ;;  %1618 = vmatprep.subr.bf16.mxu1 %v1766_v15 }
 0x8e2   :  { %1613 = vmatpush3.bf16.xpose.msra.mxu0 %v925_v12  ;;  %1614 = vmatprep.mubr.msk.bf16.mxu0 %vm1767_vm1, %v1766_v15 }
 0x8e3   :  { %1624 = vmatprep.subr.bf16.mxu0 %v1766_v15 }
 0x8e7   :  { %1609 = vmatmul.mubr.msk.bf16.vlgmr.msra.gmra.mrb[20].mxu1 %vm176_vm2, %v868_v13 }
 0x8e8   :  { %1620 = vmatprep.mubr.msk.bf16.mxu1 %vm1767_vm1, %v1766_v15 }
 0x8e9   :  { %1615 = vmatmul.mubr.msk.bf16.vlgmr.msra.gmra.mrb[32].mxu0 %vm176_vm2, %v918_v14 }
 0x8ea   :  { %1626 = vmatprep.mubr.msk.bf16.mxu0 %vm1767_vm1, %v1766_v15 }
 0x9b0   :  { %v802_v16 = vpop.f32.mrb[16].mxu1 }
 0x9b1   :  { %v1598_v17 = vpop.f32.mrb[17].mxu1 }
 0x9b2   :  { %v805_v18 = vpop.f32.mrb[18].mxu1 }
 0x9b3   :  { %v1599_v19 = vpop.f32.mrb[19].mxu1 }
 0x9b4   :  { %v850_v20 = vpop.f32.mrb[28].mxu0 }
 0x9b5   :  { %v1604_v21 = vpop.f32.mrb[29].mxu0 }
 0x9b6   :  { %v853_v22 = vpop.f32.mrb[30].mxu0 }
 0x9b7   :  { %v1605_v23 = vpop.f32.mrb[31].mxu0 }
 0x9ba   :  { %v911_v24 = vpop.f32.mrb[20].mxu1 }
 0x9bb   :  { %v967_v25 = vsel %vm1920_vm3, %v911_v24, -inf  ;;  %v1610_v27 = vpop.f32.mrb[21].mxu1 }
 0x9bc   :  { %v914_v28 = vpop.f32.mrb[22].mxu1  ;;  %v961_v29 = vpop.f32.mrb[32].mxu0  ;;  %v969_v31 = vsel %vm176_vm2, %v967_v25, -inf }
 0x9bd   :  { %v968_v32 = vsel %vm1920_vm3, %v961_v29, -inf  ;;  %970 = vmax.xlane.f32.xlu0 %v969_v31  ;;  %v1611_v33 = vpop.f32.mrb[23].mxu1  ;;  %v1616_v34 = vpop.f32.mrb[33].mxu0 }
 0x9be   :  { %v964_v35 = vpop.f32.mrb[34].mxu0  ;;  %v972_v36 = vsel %vm176_vm2, %v968_v32, -inf }
 0x9bf   :  { %973 = vmax.xlane.f32.xlu1 %v972_v36  ;;  %v1617_v37 = vpop.f32.mrb[35].mxu0 }
 0x9c0   :  { %v1688_v37 = vld [vmem:[%s2165_s9] sm:$0xff]  }
 0x9d0   :  { %1041 = vrot.lane.b32.xlu1 %v1900_v42, %s1778_s27 }
 0x9d4   :  { %625 = vrot.lane.b32.xlu1 %v1994_v26, %s1779_s28 }
 0x9d8   :  { %627 = vrot.lane.b32.xlu1 %v1996_v30, %s1779_s28 }
 0x9dc   :  { %860 = vrot.lane.b32.xlu1 %v850_v20, %s1780_s0 }
 0xa4a   :  { %v971_v54 = vpop.xlane.xlu0 %970 }
 0xa4b   :  { %v975_v38 = vsub.f32 %v967_v25, %v971_v54  ;;  %v1689_v54 = vld [vmem:[%s2165_s9 + $0x8] sm:$0xff]  }
 0xa4c   :  { %v974_v40 = vpop.xlane.xlu1 %973 }
 0xa4d   :  { %v977_v41 = vmul.f32 1.442695, %v975_v38  ;;  %v976_v43 = vsub.f32 %v968_v32, %v974_v40  ;;  %v1690_v38 = vld [vmem:[%s2167_s11] sm:$0xff]  }
 0xa4f   :  { %1726 = vpow2.f32 %v977_v41  ;;  %v979_v44 = vmul.f32 1.442695, %v976_v43 }
 0xa50   :  { %v1042_v45 = vpop.permute.xlu1 %1041 }
 0xa51   :  { %1728 = vpow2.f32 %v979_v44  ;;  %v1047_v42 = vsel %vm305_vm4, %v1042_v45, 0 }
 0xa52   :  { %1625 = vmatpush3.bf16.msra.mxu0 %v1047_v42 }
 0xa53   :  { %1638 = vmatprep.subr.bf16.mxu0 %v1766_v15 }
 0xa54   :  { %v626_v26 = vpop.permute.xlu1 %625 }
 0xa55   :  { %632 = vst.msk [vmem:[#allocation2] sm:$0xff] %vm631_vm5, %v626_v26 }
 0xa58   :  { %v628_v30 = vpop.permute.xlu1 %627 }
 0xa59   :  { %v1727_v46 = vpop.eup %1726  ;;  %633 = vst.msk [vmem:[#allocation2 + $0x8] sm:$0xff] %vm631_vm5, %v628_v30 }
 0xa5a   :  { %v981_v48 = vsel %vm176_vm2, %v1727_v46, 0.0 }
 0xa5b   :  { %v1729_v49 = vpop.eup %1728  ;;  %982 = vadd.xlane.f32.xlu0 %v981_v48 }
 0xa5c   :  { %v861_v51 = vpop.permute.xlu1 %860  ;;  %v984_v52 = vsel %vm176_vm2, %v1729_v49, 0.0 }
 0xa5d   :  { %866 = vst.msk [vmem:[#allocation2 + $0x8] sm:$0xff] %vm864_vm6, %v861_v51 }
 0xa5f   :  { %985 = vadd.xlane.f32.xlu0 %v984_v52  ;;  %v1462_v52 = vld [vmem:[%s2164_s8] ss:$0 sm:$0xff] }
 0xa75   :  { %993 = vrot.lane.b32.xlu0 %v1898_v39, %s1778_s27 }
 0xa79   :  { %858 = vrot.lane.b32.xlu0 %v802_v16, %s1780_s0  ;;  %v1457_v16 = vld [vmem:[%s2162_s6] ss:$0 sm:$0xff]  ;;  %s1782_s6 = smov [#allocation3]  }
 0xa7a   :  { %s1424_s17 = sshll.u32 %s1782_s6, 4  ;;  %s1425_s17 = int_to_ptr.vmem [resolvable:$true] %s1424_s17 }
 0xa7b   :  { %s1742_s18 = scalar_lea.vmem %s1425_s17, 256  ;;  %p1747_p1 = scmp.lt.s32.totalorder %s1425_s17, %s1425_s17 }
 0xa7c   :  { %p1743_p0 = scmp.ne.s32.totalorder %s1425_s17, %s1742_s18  ;;  %p1748_p2 = scmp.lt.s32.totalorder %s1742_s18, %s1742_s18 }
 0xa7e   :  { %p1749_p3 = por %p1748_p2, %p1747_p1 }
 0xa80   :  { %p1750_p4 = pnand %p1749_p3, %p1743_p0 }
 0xae8   :  { %v983_v53 = vpop.xlane.xlu0 %982 }
 0xae9   :  { %1730 = vrcp.f32 %v983_v53 }
 0xaec   :  { %v986_v55 = vpop.xlane.xlu0 %985 }
 0xaed   :  { %1732 = vrcp.f32 %v986_v55 }
 0xaf0   :  { %v994_v56 = vpop.permute.xlu0 %993 }
 0xaf1   :  { %v999_v57 = vsel %vm305_vm4, %v994_v56, 0 }
 0xaf2   :  { %1619 = vmatpush3.bf16.msra.mxu1 %v999_v57 }
 0xaf3   :  { %v1731_v58 = vpop.eup %1730  ;;  %1630 = vmatprep.subr.bf16.mxu1 %v1766_v15 }
 0xaf4   :  { %v989_v59 = vmul.f32 %v1731_v58, %v1727_v46  ;;  %v859_v60 = vpop.permute.xlu0 %858  ;;  %v1461_v46 = vld [vmem:[%s2163_s7] ss:$0 sm:$0xff]  ;;  %v1691_v58 = vld [vmem:[%s2167_s11 + $0x8] sm:$0xff]  }
 0xaf5   :  { %865 = vst.msk [vmem:[#allocation2] sm:$0xff] %vm864_vm6, %v859_v60  ;;  %v1693_v60 = vld [vmem:[%s2167_s11 + $0x18] sm:$0xff]  }
 0xaf6   :  { %v991_v61 = vpack.c.bf16 %v989_v59, %v989_v59  ;;  %v1692_v59 = vld [vmem:[%s2167_s11 + $0x10] sm:$0xff]  }
 0xaf7   :  { %v1733_v50 = vpop.eup %1732 }
 0xaf8   :  { %v990_v62 = vmul.f32 %v1733_v50, %v1729_v49  ;;  %1621 = vmatmul.mubr.msk.bf16.vlgmr.msra.gmra.mrb[24].mxu1 %vm176_vm2, %v991_v61  ;;  %v1694_v61 = vld [vmem:[%s2167_s11 + $0x20] sm:$0xff]   ;;  %v1695_v50 = vld [vmem:[%s2167_s11 + $0x28] sm:$0xff]  }
 0xaf9   :  { %1634 = vmatprep.mubr.msk.bf16.mxu1 %vm1767_vm1, %v1766_v15  ;;  %1631 = vmatpush3.bf16.msra.mxu1 %v1686_v63  ;;  %v1463_v63 = vld [vmem:[%s2166_s10] ss:$0 sm:$0xff] }
 0xafa   :  { %v992_v39 = vpack.c.bf16 %v990_v62, %v990_v62  ;;  %1632 = vmatprep.subr.bf16.mxu1 %v1766_v15  ;;  %v1696_v62 = vld [vmem:[%s2167_s11 + $0x30] sm:$0xff]  }
 0xafc   :  { %1627 = vmatmul.mubr.msk.bf16.vlgmr.msra.gmra.mrb[36].mxu0 %vm176_vm2, %v992_v39  ;;  %v1697_v39 = vld [vmem:[%s2167_s11 + $0x38] sm:$0xff]  }
 0xafd   :  { %1642 = vmatprep.mubr.msk.bf16.mxu0 %vm1767_vm1, %v1766_v15  ;;  %1633 = vmatpush3.bf16.msra.mxu1 %v1687_v2 }
 0xafe   :  { %1646 = vmatprep.subr.bf16.mxu1 %v1766_v15  ;;  %1639 = vmatpush3.bf16.msra.mxu0 %v1688_v37 }
 0xaff   :  { %1640 = vmatprep.subr.bf16.mxu0 %v1766_v15 }
 0xb02   :  { %1641 = vmatpush3.bf16.msra.mxu0 %v1689_v54 }
 0xbcb   :  { %v1035_v3 = vpop.f32.mrb[24].mxu1 }
 0xbcc   :  { %1091 = vrot.lane.b32.xlu0 %v1035_v3, %s1781_s15  ;;  %v1622_v4 = vpop.f32.mrb[25].mxu1 }
 0xbcd   :  { %v1038_v5 = vpop.f32.mrb[26].mxu1 }
 0xbce   :  { %v1623_v6 = vpop.f32.mrb[27].mxu1 }
 0xbcf   :  { %v1083_v7 = vpop.f32.mrb[36].mxu0 }
 0xbd0   :  { %1093 = vrot.lane.b32.xlu1 %v1083_v7, %s1781_s15  ;;  %v1628_v8 = vpop.f32.mrb[37].mxu0 }
 0xbd1   :  { %v1086_v9 = vpop.f32.mrb[38].mxu0 }
 0xbd2   :  { %v1629_v10 = vpop.f32.mrb[39].mxu0 }
 0xc3e   :  { %v1092_v47 = vpop.permute.xlu0 %1091 }
 0xc3f   :  { %1098 = vst.msk [vmem:[#allocation2] sm:$0xff] %vm1097_vm7, %v1092_v47 }
 0xc42   :  { %v1094_v11 = vpop.permute.xlu1 %1093 }
 0xc43   :  { %1099 = vst.msk [vmem:[#allocation2 + $0x8] sm:$0xff] %vm1097_vm7, %v1094_v11 }
 0xc46   :  { %v1100_v12 = vld [vmem:[#allocation2] sm:$0xff] }
 0xc4a   :  { %v1101_v13 = vld [vmem:[#allocation2 + $0x8] sm:$0xff] }
 0xc4b   :  { %v1102_v14 = vpack.c.bf16 %v1101_v13, %v1100_v12 }
 0xc4d   :  { %1635 = vmatmul.mubr.msk.bf16.vlgmr.msra.gmra.mrb[28].mxu1 %vm50_vm0, %v1102_v14 }
 0xc4e   :  { %1662 = vmatprep.mubr.msk.bf16.mxu1 %vm1767_vm1, %v1766_v15  ;;  %1647 = vmatpush3.bf16.msra.mxu1 %v1690_v38 }
 0xc4f   :  { %1648 = vmatprep.subr.bf16.mxu1 %v1766_v15 }
 0xc52   :  { %1649 = vmatpush3.bf16.msra.mxu1 %v1691_v58 }
 0xc53   :  { %1650 = vmatprep.subr.bf16.mxu1 %v1766_v15 }
 0xc56   :  { %1651 = vmatpush3.bf16.msra.mxu1 %v1692_v59 }
 0xc57   :  { %1652 = vmatprep.subr.bf16.mxu1 %v1766_v15 }
 0xc5a   :  { %1653 = vmatpush3.bf16.msra.mxu1 %v1693_v60 }
 0xc5b   :  { %1654 = vmatprep.subr.bf16.mxu1 %v1766_v15 }
 0xc5e   :  { %1655 = vmatpush3.bf16.msra.mxu1 %v1694_v61 }
 0xc5f   :  { %1656 = vmatprep.subr.bf16.mxu1 %v1766_v15 }
 0xc62   :  { %1657 = vmatpush3.bf16.msra.mxu1 %v1695_v50 }
 0xc63   :  { %1658 = vmatprep.subr.bf16.mxu1 %v1766_v15 }
 0xc66   :  { %1659 = vmatpush3.bf16.msra.mxu1 %v1696_v62 }
 0xc67   :  { %1660 = vmatprep.subr.bf16.mxu1 %v1766_v15 }
 0xc6a   :  { %1661 = vmatpush3.bf16.msra.mxu1 %v1697_v39 }
 0xd20   :  { %v1163_v17 = vpop.f32.mrb[28].mxu1 }
 0xd21   :  { %v1164_v18 = vadd.f32 %v1457_v16, %v1163_v17  ;;  %v1636_v19 = vpop.f32.mrb[29].mxu1 }
 0xd22   :  { %v1166_v20 = vpop.f32.mrb[30].mxu1 }
 0xd23   :  { %v2075_v21 = vadd.f32 %v1164_v18, %v1857_v0  ;;  %v1167_v22 = vadd.f32 %v1457_v16, %v1166_v20  ;;  %v1637_v23 = vpop.f32.mrb[31].mxu1 }
 0xd25   :  { %v2078_v24 = vadd.f32 %v1167_v22, %v1862_v1  ;;  %v1174_v25 = vsel %vm50_vm0, %v2075_v21, 0.0 }
 0xd26   :  { %1175 = vadd.xlane.f32.xlu0 %v1174_v25 }
 0xd27   :  { %v1177_v27 = vsel %vm50_vm0, %v2078_v24, 0.0 }
 0xd28   :  { %1178 = vadd.xlane.f32.xlu1 %v1177_v27 }
 0xdb3   :  { %v1176_v28 = vpop.xlane.xlu0 %1175 }
 0xdb4   :  { %v1180_v29 = vmul.f32 0.03125, %v1176_v28 }
 0xdb5   :  { %v1179_v31 = vpop.xlane.xlu1 %1178 }
 0xdb6   :  { %v1182_v32 = vsub.f32 %v2075_v21, %v1180_v29  ;;  %v1181_v0 = vmul.f32 0.03125, %v1179_v31  ;;  %v1467_v29 = vld [vmem:[%s2168_s12] ss:$0 sm:$0xff] }
 0xdb8   :  { %v1183_v33 = vsub.f32 %v2078_v24, %v1181_v0  ;;  %v1184_v34 = vmul.f32 %v1182_v32, %v1182_v32 }
 0xdba   :  { %v1186_v1 = vsel %vm50_vm0, %v1184_v34, 0.0  ;;  %v1185_v35 = vmul.f32 %v1183_v33, %v1183_v33 }
 0xdbb   :  { %1187 = vadd.xlane.f32.xlu0 %v1186_v1 }
 0xdbc   :  { %v1189_v36 = vsel %vm50_vm0, %v1185_v35, 0.0 }
 0xdbf   :  { %1190 = vadd.xlane.f32.xlu0 %v1189_v36 }
 0xe48   :  { %v1188_v40 = vpop.xlane.xlu0 %1187 }
 0xe49   :  { %v1192_v41 = vmul.f32 0.03125, %v1188_v40 }
 0xe4b   :  { %v1194_v43 = vadd.f32 1e-05, %v1192_v41 }
 0xe4c   :  { %v1191_v44 = vpop.xlane.xlu0 %1190 }
 0xe4d   :  { %1734 = vrsqrt.f32 %v1194_v43  ;;  %v1193_v45 = vmul.f32 0.03125, %v1191_v44 }
 0xe4f   :  { %v1195_v42 = vadd.f32 1e-05, %v1193_v45 }
 0xe51   :  { %1736 = vrsqrt.f32 %v1195_v42 }
 0xe57   :  { %v1735_v26 = vpop.eup %1734 }
 0xe58   :  { %v1198_v30 = vmul.f32 %v1735_v26, %v1182_v32 }
 0xe5a   :  { %v1206_v49 = vmul.f32 %v1461_v46, %v1198_v30 }
 0xe5b   :  { %v1737_v48 = vpop.eup %1736 }
 0xe5c   :  { %v1199_v51 = vmul.f32 %v1737_v48, %v1183_v33  ;;  %v1214_v55 = vadd.f32 %v1462_v52, %v1206_v49 }
 0xe5e   :  { %v1207_v53 = vmul.f32 %v1461_v46, %v1199_v51 }
 0xe60   :  { %v1215_v56 = vadd.f32 %v1462_v52, %v1207_v53 }
 0xe62   :  { %v1216_v57 = vpack.c.bf16 %v1215_v56, %v1214_v55 }
 0xe64   :  { %1643 = vmatmul.mubr.msk.bf16.vlgmr.msra.gmra.mrb[40].mxu0 %vm50_vm0, %v1216_v57 }
 0xf37   :  { %v1277_v2 = vpop.f32.mrb[40].mxu0 }
 0xf38   :  { %v1278_v3 = vadd.f32 %v1463_v63, %v1277_v2  ;;  %v1644_v4 = vpop.f32.mrb[41].mxu0 }
 0xf39   :  { %v1280_v5 = vpop.f32.mrb[42].mxu0 }
 0xf3a   :  { %v1286_v6 = vmul.f32 %v1278_v3, %v1278_v3  ;;  %v1281_v7 = vadd.f32 %v1463_v63, %v1280_v5  ;;  %v1645_v8 = vpop.f32.mrb[43].mxu0  ;;  %v1284_v47 = vmul.f32 0.7978846, %v1278_v3  ;;  %v1294_v20 = vmul.f32 0.5, %v1278_v3 }
 0xf3c   :  { %v1288_v9 = vmul.f32 0.035677407, %v1286_v6  ;;  %v1287_v10 = vmul.f32 %v1281_v7, %v1281_v7  ;;  %v1285_v14 = vmul.f32 0.7978846, %v1281_v7  ;;  %v1295_v22 = vmul.f32 0.5, %v1281_v7 }
 0xf3e   :  { %v1290_v11 = vmul.f32 %v1288_v9, %v1278_v3  ;;  %v1289_v12 = vmul.f32 0.035677407, %v1287_v10 }
 0xf40   :  { %v1292_v13 = vadd.f32 %v1290_v11, %v1284_v47  ;;  %v1291_v15 = vmul.f32 %v1289_v12, %v1281_v7 }
 0xf42   :  { %1738 = vtanh.f32 %v1292_v13  ;;  %v1293_v16 = vadd.f32 %v1291_v15, %v1285_v14 }
 0xf44   :  { %1740 = vtanh.f32 %v1293_v16 }
 0xf4c   :  { %v1739_v17 = vpop.eup %1738 }
 0xf4d   :  { %v1298_v18 = vadd.f32 1.0, %v1739_v17 }
 0xf4e   :  { %v1741_v19 = vpop.eup %1740 }
 0xf4f   :  { %v1299_v23 = vadd.f32 1.0, %v1741_v19  ;;  %v1300_v25 = vmul.f32 %v1298_v18, %v1294_v20 }
 0xf51   :  { %v1301_v27 = vmul.f32 %v1299_v23, %v1295_v22 }
 0xf53   :  { %v1302_v28 = vpack.c.bf16 %v1301_v27, %v1300_v25 }
 0xf55   :  { %1663 = vmatmul.mubr.bf16.vlgmr.msra.gmra.mrb[32].mxu1 %v1302_v28 }
0x1028   :  { %v1408_v31 = vpop.f32.mrb[32].mxu1 }
0x1029   :  { %v1409_v32 = vadd.f32 %v1467_v29, %v1408_v31  ;;  %v1664_v0 = vpop.f32.mrb[33].mxu1 }
0x102a   :  { %v1411_v33 = vpop.f32.mrb[34].mxu1 }
0x102b   :  { %v1415_v34 = vadd.f32 %v1409_v32, %v2075_v21  ;;  %v1412_v1 = vadd.f32 %v1467_v29, %v1411_v33  ;;  %v1665_v35 = vpop.f32.mrb[35].mxu1 }
0x102d   :  { %1417 = vst.msk [vmem:[#allocation3] sm:$0xff] %vm50_vm0, %v1415_v34  ;;  %v1416_v36 = vadd.f32 %v1412_v1, %v2078_v24 }
0x102f   :  { %1418 = vst.msk [vmem:[#allocation3 + $0x8] sm:$0xff] %vm50_vm0, %v1416_v36 }
0x1030   :  { %1753 = shalt.err (!%p1750_p4)
}
0x1031   :  { %s1754_s1 = scalar_lea.hbm %s2169_s13, 256 }
0x1032   :  { %p1755_p5 = scmp.ne.s32.totalorder %s2169_s13, %s1754_s1  ;;  %p1758_p6 = scmp.lt.u32.totalorder %s1754_s1, %s2169_s13 }
0x1034   :  { %p1760_p7 = pnand %p1758_p6, %p1755_p5 }
0x1036   :  { %1763 = shalt.err (!%p1760_p7)
}
0x1037   :  { %s1783_s21 = smov 128  }
0x1038   :  { %1430 = dma.vmem_to_hbm [thread:$0]  %s1425_s17, 256, %s2169_s13, [#allocation4], %s1783_s21, %s1783_s21, %s1779_s28  }
0x1039   :  { %1764 = dma.done.wait [#allocation4], 256  }
0x103a   :  { %1765 = vsyncadd [#allocation4], 4294967040 }
0x103b   :  { %1434 = vsyncpa [#allocation4], 1 }

</bundles_post_ra>
